<compile_context>
chip_gen: v5e
topology: v5e:2x2
jax: 0.10.0
libtpu: 0.0.40
codegen_flags: <defaults>
</compile_context>

<pallas_src>
import math

import jax
import jax.numpy as jnp
from jax.experimental import pallas as pl
from jax.experimental.pallas import tpu as pltpu

# ----------------------------- small ViT config ------------------------------
PATCH = 16
IMG = 32                      # input_size (must be divisible by PATCH)
IN_CH = 3
HIDDEN = 32
HEADS = 4
HEAD_DIM = HIDDEN // HEADS
MLP = 64
LAYERS = 2
NUM_CLASSES = 10
BATCH = 2
N_PATCH = (IMG // PATCH) ** 2
SEQ = N_PATCH + 1             # class token + patches
R_PAD = ((SEQ + 7) // 8) * 8  # token rows padded to a sublane multiple of 8
CPP = IN_CH * PATCH * PATCH
LN_EPS = 1e-6                 # torchvision ViT uses LayerNorm(eps=1e-6)
NEG_MASK = -1e9               # large-but-safe mask; exp underflows cleanly to 0


# ------------------------------ helper math ----------------------------------
def _erf_approx(x):
    # Abramowitz & Stegun 7.1.26 (|err| < 1.5e-7): exact (erf-based) nn.GELU
    # semantics without relying on an erf lowering inside Mosaic.
    a1, a2, a3, a4, a5 = 0.254829592, -0.284496736, 1.421413741, -1.453152027, 1.061405429
    p = 0.3275911
    sgn = jnp.where(x >= 0.0, 1.0, -1.0)
    ax = jnp.abs(x)
    t = 1.0 / (1.0 + p * ax)
    poly = ((((a5 * t + a4) * t + a3) * t + a2) * t + a1) * t
    return sgn * (1.0 - poly * jnp.exp(-ax * ax))


def _gelu_exact(x):
    return 0.5 * x * (1.0 + _erf_approx(x * (1.0 / math.sqrt(2.0))))


def _ln(x, g, b):
    mu = jnp.mean(x, axis=-1, keepdims=True)
    xc = x - mu
    var = jnp.mean(xc * xc, axis=-1, keepdims=True)
    return xc * jax.lax.rsqrt(var + LN_EPS) * g + b


def _softmax(x):
    x = x - jnp.max(x, axis=-1, keepdims=True)
    e = jnp.exp(x)
    return e * pl.reciprocal(jnp.sum(e, axis=-1, keepdims=True), approx=True)


# ------------------------------ fused kernel ----------------------------------
def vit_fused_kernel(xp_ref, convw_ref, rowb_ref,
                     ln1g_ref, ln1b_ref, qkvw_ref, qkvb_ref, ow_ref, ob_ref,
                     ln2g_ref, ln2b_ref, w1_ref, b1_ref, w2_ref, b2_ref,
                     lng_ref, lnb_ref, hw_ref, hb_ref, o_ref, ctx_ref):
    """One grid step = one batch element (R_PAD token rows), all layers fused."""
    # ---- patch embedding.  Row 0 of xp is the zero class-token slot and rows
    # SEQ..R_PAD-1 are zero padding; the per-row bias (conv bias / class token +
    # positional embedding, zeros on padded rows) is precomputed, so one
    # (R_PAD, CPP) @ (CPP, D) matmul builds the padded sequence. ----
    x = jnp.dot(xp_ref[...], convw_ref[...], preferred_element_type=jnp.float32)
    x = x + rowb_ref[...]                                     # (R_PAD, D)

    # Key-padding mask built in-kernel: padded key columns get -1e9.  Padded
    # query rows still see valid (unmasked) keys, so softmax never sees an
    # all-masked row.
    col = jax.lax.broadcasted_iota(jnp.int32, (R_PAD, R_PAD), 1)
    attn_mask = jnp.where(col < SEQ, 0.0, NEG_MASK).astype(jnp.float32)

    for l in range(LAYERS):                                   # static unroll
        # ---- pre-norm multi-head self-attention ----
        y = _ln(x, ln1g_ref[l], ln1b_ref[l])
        qkv = jnp.dot(y, qkvw_ref[l], preferred_element_type=jnp.float32) + qkvb_ref[l]
        q = qkv[:, 0:HIDDEN]                                  # 1/sqrt(dh) folded into W_q/b_q
        k = qkv[:, HIDDEN:2 * HIDDEN]
        v = qkv[:, 2 * HIDDEN:3 * HIDDEN]

        # Per-head contraction directly on lane slices (no stacked (H,R,8)
        # tensors); each head's context lands in its 8-lane slice of ctx_ref.
        for h in range(HEADS):
            lo, hi = h * HEAD_DIM, (h + 1) * HEAD_DIM
            s = jax.lax.dot_general(q[:, lo:hi], k[:, lo:hi],
                                    (((1,), (1,)), ((), ())),
                                    preferred_element_type=jnp.float32)
            p = _softmax(s + attn_mask)                       # (R_PAD, R_PAD)
            ctx_ref[:, lo:hi] = jnp.dot(p, v[:, lo:hi],
                                        preferred_element_type=jnp.float32)

        # Single full-depth output projection: (R,32)@(32,32).
        attn_out = jnp.dot(ctx_ref[...], ow_ref[l],
                           preferred_element_type=jnp.float32) + ob_ref[l]
        x = x + attn_out                                      # residual 1

        # ---- pre-norm MLP (Linear -> exact GELU -> Linear) ----
        z = _ln(x, ln2g_ref[l], ln2b_ref[l])
        hmid = jnp.dot(z, w1_ref[l], preferred_element_type=jnp.float32) + b1_ref[l]
        hmid = _gelu_exact(hmid)
        x = x + jnp.dot(hmid, w2_ref[l], preferred_element_type=jnp.float32) + b2_ref[l]

    # ---- final LayerNorm + class-token Linear head (class token is row 0) ----
    cls = x[0:1, :]                                           # (1, D)
    ycls = _ln(cls, lng_ref[...], lnb_ref[...])
    o_ref[...] = (jnp.dot(ycls, hw_ref[...], preferred_element_type=jnp.float32)
                  + hb_ref[...])


# ----------------------------- pallas wrapper ----------------------------------
def vit_pallas_call(xp_aug, prepped):
    weight_specs = [pl.BlockSpec(w.shape, lambda b, nd=w.ndim: (0,) * nd)
                    for w in prepped]
    out = pl.pallas_call(
        vit_fused_kernel,
        out_shape=jax.ShapeDtypeStruct((BATCH, 1, NUM_CLASSES), jnp.float32),
        grid=(BATCH,),
        in_specs=[pl.BlockSpec((None, R_PAD, CPP), lambda b: (b, 0, 0))]
                 + weight_specs,
        out_specs=pl.BlockSpec((None, 1, NUM_CLASSES), lambda b: (b, 0, 0)),
        scratch_shapes=[pltpu.VMEM((R_PAD, HIDDEN), jnp.float32)],
        compiler_params=pltpu.CompilerParams(
            dimension_semantics=("parallel",)),
    )(xp_aug, *prepped)
    return out.reshape(BATCH, NUM_CLASSES)


# ------------------------------ parameters ------------------------------------
def init_params(key):
    keys = iter(jax.random.split(key, 64))

    def nrm(shape, scale=0.02):
        return scale * jax.random.normal(next(keys), shape, jnp.float32)

    params = {
        "conv_w": nrm((HIDDEN, IN_CH, PATCH, PATCH)),
        "conv_b": nrm((HIDDEN,)),
        "class_token": nrm((1, 1, HIDDEN)),
        "pos_emb": nrm((1, SEQ, HIDDEN)),
        "ln_g": jnp.ones((HIDDEN,), jnp.float32),
        "ln_b": jnp.zeros((HIDDEN,), jnp.float32),
        "head_w": nrm((NUM_CLASSES, HIDDEN)),
        "head_b": jnp.zeros((NUM_CLASSES,), jnp.float32),
        "layers": [],
    }
    for _ in range(LAYERS):
        params["layers"].append(dict(
            ln1_g=jnp.ones((HIDDEN,), jnp.float32), ln1_b=jnp.zeros((HIDDEN,), jnp.float32),
            qkv_w=nrm((3 * HIDDEN, HIDDEN)), qkv_b=nrm((3 * HIDDEN,)),
            out_w=nrm((HIDDEN, HIDDEN)), out_b=nrm((HIDDEN,)),
            ln2_g=jnp.ones((HIDDEN,), jnp.float32), ln2_b=jnp.zeros((HIDDEN,), jnp.float32),
            mlp_w1=nrm((MLP, HIDDEN)), mlp_b1=nrm((MLP,)),
            mlp_w2=nrm((HIDDEN, MLP)), mlp_b2=nrm((HIDDEN,)),
        ))
    return params


def prep_params(params):
    """One-time: transpose / stack / pad / pre-scale all weights into kernel layout."""
    scale = 1.0 / math.sqrt(HEAD_DIM)

    cls = params["class_token"][0, 0]                       # (D,)
    pos = params["pos_emb"][0]                              # (SEQ, D)
    # Per-row additive bias: class-token row = cls + pos[0] (its xp row is zero);
    # patch rows = conv_b + pos[1:]; padded rows = 0.
    row_bias = jnp.concatenate(
        [(cls + pos[0])[None, :],
         params["conv_b"][None, :] + pos[1:],
         jnp.zeros((R_PAD - SEQ, HIDDEN), jnp.float32)], axis=0)   # (R_PAD, D)

    conv_w = params["conv_w"].reshape(HIDDEN, CPP).T        # (CPP, D)

    def qkv_w_prep(l):
        wt = l["qkv_w"].T                                   # (D, 3D)
        return jnp.concatenate([wt[:, :HIDDEN] * scale, wt[:, HIDDEN:]], axis=1)

    def qkv_b_prep(l):
        b = l["qkv_b"]
        return jnp.concatenate([b[:HIDDEN] * scale, b[HIDDEN:]])[None, :]

    layers = params["layers"]
    stk = lambda f: jnp.stack([f(l) for l in layers], axis=0)
    return (
        conv_w, row_bias,
        stk(lambda l: l["ln1_g"][None, :]), stk(lambda l: l["ln1_b"][None, :]),
        stk(qkv_w_prep),                    stk(qkv_b_prep),
        stk(lambda l: l["out_w"].T),        stk(lambda l: l["out_b"][None, :]),
        stk(lambda l: l["ln2_g"][None, :]), stk(lambda l: l["ln2_b"][None, :]),
        stk(lambda l: l["mlp_w1"].T),       stk(lambda l: l["mlp_b1"][None, :]),
        stk(lambda l: l["mlp_w2"].T),       stk(lambda l: l["mlp_b2"][None, :]),
        params["ln_g"][None, :], params["ln_b"][None, :],
        params["head_w"].T, params["head_b"][None, :],
    )


# ------------------------------ full forward -----------------------------------
def _patchify(x_nchw):
    B = x_nchw.shape[0]
    hp = IMG // PATCH
    xp = x_nchw.reshape(B, IN_CH, hp, PATCH, hp, PATCH)
    xp = xp.transpose(0, 2, 4, 1, 3, 5)                       # (B, hp, wp, c, kh, kw)
    return xp.reshape(B, N_PATCH, CPP)


def vit_forward(prepped, x_nchw):
    xp = _patchify(x_nchw)                                    # (B, N_PATCH, CPP)
    # Zero row in front (class-token slot, value arrives via the precomputed row
    # bias) and zero rows at the end (sublane padding to R_PAD).
    xp_aug = jnp.pad(xp, ((0, 0), (1, R_PAD - SEQ), (0, 0)))  # (B, R_PAD, CPP)
    return vit_pallas_call(xp_aug, prepped)


# ------------------------------ jnp reference -----------------------------------
def vit_reference(params, x_nchw):
    B = x_nchw.shape[0]
    xp = _patchify(x_nchw)
    w = params["conv_w"].reshape(HIDDEN, -1).T
    tok = xp @ w + params["conv_b"]
    cls = jnp.broadcast_to(params["class_token"], (B, 1, HIDDEN))
    x = jnp.concatenate([cls, tok], axis=1) + params["pos_emb"]
    for lyr in params["layers"]:
        y = _ln(x, lyr["ln1_g"], lyr["ln1_b"])
        qkv = y @ lyr["qkv_w"].T + lyr["qkv_b"]
        q, k, v = jnp.split(qkv, 3, axis=-1)
        q = q.reshape(B, SEQ, HEADS, HEAD_DIM).transpose(0, 2, 1, 3)
        k = k.reshape(B, SEQ, HEADS, HEAD_DIM).transpose(0, 2, 1, 3)
        v = v.reshape(B, SEQ, HEADS, HEAD_DIM).transpose(0, 2, 1, 3)
        s = (q @ k.transpose(0, 1, 3, 2)) / math.sqrt(HEAD_DIM)
        p = jax.nn.softmax(s, axis=-1)
        ctx = (p @ v).transpose(0, 2, 1, 3).reshape(B, SEQ, HIDDEN)
        x = x + (ctx @ lyr["out_w"].T + lyr["out_b"])
        z = _ln(x, lyr["ln2_g"], lyr["ln2_b"])
        h1 = jax.nn.gelu(z @ lyr["mlp_w1"].T + lyr["mlp_b1"], approximate=False)
        x = x + (h1 @ lyr["mlp_w2"].T + lyr["mlp_b2"])
    y = _ln(x, params["ln_g"], params["ln_b"])
    return y[:, 0, :] @ params["head_w"].T + params["head_b"]


# ---------------------------------- main -----------------------------------------
if __name__ == "__main__":
    key = jax.random.PRNGKey(0)
    pkey, xkey = jax.random.split(key)
    params = init_params(pkey)
    x = jax.random.normal(xkey, (BATCH, IN_CH, IMG, IMG), jnp.float32)

    prepped = prep_params(params)                 # one-time weight prep (outside jit)

    logits = jax.jit(vit_forward)(prepped, x)
    logits = jax.block_until_ready(logits)
    assert logits.shape == (BATCH, NUM_CLASSES), logits.shape

    ref = vit_reference(params, x)
    if not jnp.allclose(logits, ref, atol=2e-3, rtol=2e-3):
        raise AssertionError(f"mismatch: kernel={logits}\nref={ref}")

    print("KERNEL_OK")
</pallas_src>

<mosaic_0001>
module attributes {stable_mosaic.version = 11 : i64} {
  func.func @vit_fused_kernel(%arg0: i32, %arg1: memref<1x8x768xf32, #tpu.memory_space<vmem>>, %arg2: memref<768x32xf32, #tpu.memory_space<vmem>>, %arg3: memref<8x32xf32, #tpu.memory_space<vmem>>, %arg4: memref<2x1x32xf32, #tpu.memory_space<vmem>>, %arg5: memref<2x1x32xf32, #tpu.memory_space<vmem>>, %arg6: memref<2x32x96xf32, #tpu.memory_space<vmem>>, %arg7: memref<2x1x96xf32, #tpu.memory_space<vmem>>, %arg8: memref<2x32x32xf32, #tpu.memory_space<vmem>>, %arg9: memref<2x1x32xf32, #tpu.memory_space<vmem>>, %arg10: memref<2x1x32xf32, #tpu.memory_space<vmem>>, %arg11: memref<2x1x32xf32, #tpu.memory_space<vmem>>, %arg12: memref<2x32x64xf32, #tpu.memory_space<vmem>>, %arg13: memref<2x1x64xf32, #tpu.memory_space<vmem>>, %arg14: memref<2x64x32xf32, #tpu.memory_space<vmem>>, %arg15: memref<2x1x32xf32, #tpu.memory_space<vmem>>, %arg16: memref<1x32xf32, #tpu.memory_space<vmem>>, %arg17: memref<1x32xf32, #tpu.memory_space<vmem>>, %arg18: memref<32x10xf32, #tpu.memory_space<vmem>>, %arg19: memref<1x10xf32, #tpu.memory_space<vmem>>, %arg20: memref<1x1x10xf32, #tpu.memory_space<vmem>>, %arg21: memref<8x32xf32, #tpu.memory_space<vmem>>) attributes {dimension_semantics = [#tpu.dimension_semantics<parallel>], iteration_bounds = array<i64: 2>, scalar_prefetch = 0 : i64, scratch_operands = 1 : i64, tpu.core_type = #tpu.core_type<tc>, window_params = [{transform_indices = @transform_0, window_bounds = array<i64: 1, 8, 768>}, {pipeline_mode = #tpu.pipeline_mode<synchronous>, transform_indices = @transform_1, window_bounds = array<i64: 768, 32>}, {pipeline_mode = #tpu.pipeline_mode<synchronous>, transform_indices = @transform_2, window_bounds = array<i64: 8, 32>}, {pipeline_mode = #tpu.pipeline_mode<synchronous>, transform_indices = @transform_3, window_bounds = array<i64: 2, 1, 32>}, {pipeline_mode = #tpu.pipeline_mode<synchronous>, transform_indices = @transform_4, window_bounds = array<i64: 2, 1, 32>}, {pipeline_mode = #tpu.pipeline_mode<synchronous>, transform_indices = @transform_5, window_bounds = array<i64: 2, 32, 96>}, {pipeline_mode = #tpu.pipeline_mode<synchronous>, transform_indices = @transform_6, window_bounds = array<i64: 2, 1, 96>}, {pipeline_mode = #tpu.pipeline_mode<synchronous>, transform_indices = @transform_7, window_bounds = array<i64: 2, 32, 32>}, {pipeline_mode = #tpu.pipeline_mode<synchronous>, transform_indices = @transform_8, window_bounds = array<i64: 2, 1, 32>}, {pipeline_mode = #tpu.pipeline_mode<synchronous>, transform_indices = @transform_9, window_bounds = array<i64: 2, 1, 32>}, {pipeline_mode = #tpu.pipeline_mode<synchronous>, transform_indices = @transform_10, window_bounds = array<i64: 2, 1, 32>}, {pipeline_mode = #tpu.pipeline_mode<synchronous>, transform_indices = @transform_11, window_bounds = array<i64: 2, 32, 64>}, {pipeline_mode = #tpu.pipeline_mode<synchronous>, transform_indices = @transform_12, window_bounds = array<i64: 2, 1, 64>}, {pipeline_mode = #tpu.pipeline_mode<synchronous>, transform_indices = @transform_13, window_bounds = array<i64: 2, 64, 32>}, {pipeline_mode = #tpu.pipeline_mode<synchronous>, transform_indices = @transform_14, window_bounds = array<i64: 2, 1, 32>}, {pipeline_mode = #tpu.pipeline_mode<synchronous>, transform_indices = @transform_15, window_bounds = array<i64: 1, 32>}, {pipeline_mode = #tpu.pipeline_mode<synchronous>, transform_indices = @transform_16, window_bounds = array<i64: 1, 32>}, {pipeline_mode = #tpu.pipeline_mode<synchronous>, transform_indices = @transform_17, window_bounds = array<i64: 32, 10>}, {pipeline_mode = #tpu.pipeline_mode<synchronous>, transform_indices = @transform_18, window_bounds = array<i64: 1, 10>}, {transform_indices = @transform_19, window_bounds = array<i64: 1, 1, 10>}]} {
    %c0 = arith.constant 0 : index
    %c0_0 = arith.constant 0 : index
    %c0_1 = arith.constant 0 : index
    %0 = vector.load %arg1[%c0, %c0_0, %c0_1] : memref<1x8x768xf32, #tpu.memory_space<vmem>>, vector<1x8x768xf32>
    %1 = vector.shape_cast %0 : vector<1x8x768xf32> to vector<8x768xf32>
    %c0_2 = arith.constant 0 : index
    %c0_3 = arith.constant 0 : index
    %2 = vector.load %arg2[%c0_2, %c0_3] : memref<768x32xf32, #tpu.memory_space<vmem>>, vector<768x32xf32>
    %cst = arith.constant dense<0.000000e+00> : vector<8x32xf32>
    %3 = tpu.matmul %1, %2, %cst {dimension_numbers = #tpu.dot_dimension_numbers<[1], [0], [0], [1], [0, 0, 1, 1], [], []>} : vector<8x768xf32>, vector<768x32xf32>, vector<8x32xf32> -> vector<8x32xf32>
    %c0_4 = arith.constant 0 : index
    %c0_5 = arith.constant 0 : index
    %4 = vector.load %arg3[%c0_4, %c0_5] : memref<8x32xf32, #tpu.memory_space<vmem>>, vector<8x32xf32>
    %5 = arith.addf %3, %4 : vector<8x32xf32>
    %6 = tpu.iota {dimensions = array<i32: 1>} : vector<8x8xi32>
    %c5_i32 = arith.constant 5 : i32
    %7 = vector.broadcast %c5_i32 : i32 to vector<8x8xi32>
    %8 = arith.cmpi slt, %6, %7 : vector<8x8xi32>
    %cst_6 = arith.constant 0.000000e+00 : f32
    %cst_7 = arith.constant -1.000000e+09 : f32
    %9 = vector.broadcast %cst_6 : f32 to vector<8x8xf32>
    %10 = vector.broadcast %cst_7 : f32 to vector<8x8xf32>
    %11 = arith.select %8, %9, %10 : vector<8x8xi1>, vector<8x8xf32>
    %c0_8 = arith.constant 0 : index
    %c0_9 = arith.constant 0 : index
    %c0_10 = arith.constant 0 : index
    %12 = vector.load %arg4[%c0_8, %c0_9, %c0_10] : memref<2x1x32xf32, #tpu.memory_space<vmem>>, vector<1x1x32xf32>
    %13 = vector.shape_cast %12 : vector<1x1x32xf32> to vector<1x32xf32>
    %c0_11 = arith.constant 0 : index
    %c0_12 = arith.constant 0 : index
    %c0_13 = arith.constant 0 : index
    %14 = vector.load %arg5[%c0_11, %c0_12, %c0_13] : memref<2x1x32xf32, #tpu.memory_space<vmem>>, vector<1x1x32xf32>
    %15 = vector.shape_cast %14 : vector<1x1x32xf32> to vector<1x32xf32>
    %cst_14 = arith.constant dense<0.000000e+00> : vector<8xf32>
    %16 = vector.multi_reduction <add>, %5, %cst_14 [1] : vector<8x32xf32> to vector<8xf32>
    %17 = vector.shape_cast %16 : vector<8xf32> to vector<8x1xf32>
    %cst_15 = arith.constant 3.200000e+01 : f32
    %18 = vector.broadcast %cst_15 : f32 to vector<8x1xf32>
    %19 = arith.divf %17, %18 : vector<8x1xf32>
    %20 = vector.broadcast %19 : vector<8x1xf32> to vector<8x32xf32>
    %21 = arith.subf %5, %20 : vector<8x32xf32>
    %22 = arith.mulf %21, %21 : vector<8x32xf32>
    %cst_16 = arith.constant dense<0.000000e+00> : vector<8xf32>
    %23 = vector.multi_reduction <add>, %22, %cst_16 [1] : vector<8x32xf32> to vector<8xf32>
    %24 = vector.shape_cast %23 : vector<8xf32> to vector<8x1xf32>
    %cst_17 = arith.constant 3.200000e+01 : f32
    %25 = vector.broadcast %cst_17 : f32 to vector<8x1xf32>
    %26 = arith.divf %24, %25 : vector<8x1xf32>
    %cst_18 = arith.constant 9.99999997E-7 : f32
    %27 = vector.broadcast %cst_18 : f32 to vector<8x1xf32>
    %28 = arith.addf %26, %27 : vector<8x1xf32>
    %29 = math.rsqrt %28 : vector<8x1xf32>
    %30 = vector.broadcast %29 : vector<8x1xf32> to vector<8x32xf32>
    %31 = arith.mulf %21, %30 : vector<8x32xf32>
    %32 = vector.broadcast %13 : vector<1x32xf32> to vector<8x32xf32>
    %33 = arith.mulf %31, %32 : vector<8x32xf32>
    %34 = vector.broadcast %15 : vector<1x32xf32> to vector<8x32xf32>
    %35 = arith.addf %33, %34 : vector<8x32xf32>
    %c0_19 = arith.constant 0 : index
    %c0_20 = arith.constant 0 : index
    %c0_21 = arith.constant 0 : index
    %36 = vector.load %arg6[%c0_19, %c0_20, %c0_21] : memref<2x32x96xf32, #tpu.memory_space<vmem>>, vector<1x32x96xf32>
    %37 = vector.shape_cast %36 : vector<1x32x96xf32> to vector<32x96xf32>
    %cst_22 = arith.constant dense<0.000000e+00> : vector<8x96xf32>
    %38 = tpu.matmul %35, %37, %cst_22 {dimension_numbers = #tpu.dot_dimension_numbers<[1], [0], [0], [1], [0, 0, 1, 1], [], []>} : vector<8x32xf32>, vector<32x96xf32>, vector<8x96xf32> -> vector<8x96xf32>
    %c0_23 = arith.constant 0 : index
    %c0_24 = arith.constant 0 : index
    %c0_25 = arith.constant 0 : index
    %39 = vector.load %arg7[%c0_23, %c0_24, %c0_25] : memref<2x1x96xf32, #tpu.memory_space<vmem>>, vector<1x1x96xf32>
    %40 = vector.shape_cast %39 : vector<1x1x96xf32> to vector<1x96xf32>
    %41 = vector.broadcast %40 : vector<1x96xf32> to vector<8x96xf32>
    %42 = arith.addf %38, %41 : vector<8x96xf32>
    %43 = vector.extract_strided_slice %42 {offsets = [0, 0], sizes = [8, 32], strides = [1, 1]} : vector<8x96xf32> to vector<8x32xf32>
    %44 = vector.extract_strided_slice %42 {offsets = [0, 32], sizes = [8, 32], strides = [1, 1]} : vector<8x96xf32> to vector<8x32xf32>
    %45 = vector.extract_strided_slice %42 {offsets = [0, 64], sizes = [8, 32], strides = [1, 1]} : vector<8x96xf32> to vector<8x32xf32>
    %46 = vector.extract_strided_slice %43 {offsets = [0, 0], sizes = [8, 8], strides = [1, 1]} : vector<8x32xf32> to vector<8x8xf32>
    %47 = vector.extract_strided_slice %44 {offsets = [0, 0], sizes = [8, 8], strides = [1, 1]} : vector<8x32xf32> to vector<8x8xf32>
    %cst_26 = arith.constant dense<0.000000e+00> : vector<8x8xf32>
    %48 = tpu.matmul %46, %47, %cst_26 {dimension_numbers = #tpu.dot_dimension_numbers<[1], [1], [0], [0], [0, 0, 1, 0], [], []>} : vector<8x8xf32>, vector<8x8xf32>, vector<8x8xf32> -> vector<8x8xf32>
    %49 = arith.addf %48, %11 : vector<8x8xf32>
    %cst_27 = arith.constant dense<0xFF800000> : vector<8xf32>
    %50 = vector.multi_reduction <maximumf>, %49, %cst_27 [1] : vector<8x8xf32> to vector<8xf32>
    %51 = vector.shape_cast %50 : vector<8xf32> to vector<8x1xf32>
    %52 = vector.broadcast %51 : vector<8x1xf32> to vector<8x8xf32>
    %53 = arith.subf %49, %52 : vector<8x8xf32>
    %54 = math.exp %53 : vector<8x8xf32>
    %cst_28 = arith.constant dense<0.000000e+00> : vector<8xf32>
    %55 = vector.multi_reduction <add>, %54, %cst_28 [1] : vector<8x8xf32> to vector<8xf32>
    %56 = vector.shape_cast %55 : vector<8xf32> to vector<8x1xf32>
    %57 = tpu.reciprocal %56 {approx = true} : vector<8x1xf32> -> vector<8x1xf32>
    %58 = vector.broadcast %57 : vector<8x1xf32> to vector<8x8xf32>
    %59 = arith.mulf %54, %58 : vector<8x8xf32>
    %60 = vector.extract_strided_slice %45 {offsets = [0, 0], sizes = [8, 8], strides = [1, 1]} : vector<8x32xf32> to vector<8x8xf32>
    %cst_29 = arith.constant dense<0.000000e+00> : vector<8x8xf32>
    %61 = tpu.matmul %59, %60, %cst_29 {dimension_numbers = #tpu.dot_dimension_numbers<[1], [0], [0], [1], [0, 0, 1, 1], [], []>} : vector<8x8xf32>, vector<8x8xf32>, vector<8x8xf32> -> vector<8x8xf32>
    %c0_30 = arith.constant 0 : index
    %c0_31 = arith.constant 0 : index
    %62 = vector.load %arg21[%c0_30, %c0_31] : memref<8x32xf32, #tpu.memory_space<vmem>>, vector<8x8xf32>
    tpu.vector_store %arg21[%c0_30, %c0_31], %61 {strides = array<i32>} : memref<8x32xf32, #tpu.memory_space<vmem>>, vector<8x8xf32>,
    %63 = vector.extract_strided_slice %43 {offsets = [0, 8], sizes = [8, 8], strides = [1, 1]} : vector<8x32xf32> to vector<8x8xf32>
    %64 = vector.extract_strided_slice %44 {offsets = [0, 8], sizes = [8, 8], strides = [1, 1]} : vector<8x32xf32> to vector<8x8xf32>
    %cst_32 = arith.constant dense<0.000000e+00> : vector<8x8xf32>
    %65 = tpu.matmul %63, %64, %cst_32 {dimension_numbers = #tpu.dot_dimension_numbers<[1], [1], [0], [0], [0, 0, 1, 0], [], []>} : vector<8x8xf32>, vector<8x8xf32>, vector<8x8xf32> -> vector<8x8xf32>
    %66 = arith.addf %65, %11 : vector<8x8xf32>
    %cst_33 = arith.constant dense<0xFF800000> : vector<8xf32>
    %67 = vector.multi_reduction <maximumf>, %66, %cst_33 [1] : vector<8x8xf32> to vector<8xf32>
    %68 = vector.shape_cast %67 : vector<8xf32> to vector<8x1xf32>
    %69 = vector.broadcast %68 : vector<8x1xf32> to vector<8x8xf32>
    %70 = arith.subf %66, %69 : vector<8x8xf32>
    %71 = math.exp %70 : vector<8x8xf32>
    %cst_34 = arith.constant dense<0.000000e+00> : vector<8xf32>
    %72 = vector.multi_reduction <add>, %71, %cst_34 [1] : vector<8x8xf32> to vector<8xf32>
    %73 = vector.shape_cast %72 : vector<8xf32> to vector<8x1xf32>
    %74 = tpu.reciprocal %73 {approx = true} : vector<8x1xf32> -> vector<8x1xf32>
    %75 = vector.broadcast %74 : vector<8x1xf32> to vector<8x8xf32>
    %76 = arith.mulf %71, %75 : vector<8x8xf32>
    %77 = vector.extract_strided_slice %45 {offsets = [0, 8], sizes = [8, 8], strides = [1, 1]} : vector<8x32xf32> to vector<8x8xf32>
    %cst_35 = arith.constant dense<0.000000e+00> : vector<8x8xf32>
    %78 = tpu.matmul %76, %77, %cst_35 {dimension_numbers = #tpu.dot_dimension_numbers<[1], [0], [0], [1], [0, 0, 1, 1], [], []>} : vector<8x8xf32>, vector<8x8xf32>, vector<8x8xf32> -> vector<8x8xf32>
    %c0_36 = arith.constant 0 : index
    %c8 = arith.constant 8 : index
    %79 = vector.load %arg21[%c0_36, %c8] : memref<8x32xf32, #tpu.memory_space<vmem>>, vector<8x8xf32>
    tpu.vector_store %arg21[%c0_36, %c8], %78 {strides = array<i32>} : memref<8x32xf32, #tpu.memory_space<vmem>>, vector<8x8xf32>,
    %80 = vector.extract_strided_slice %43 {offsets = [0, 16], sizes = [8, 8], strides = [1, 1]} : vector<8x32xf32> to vector<8x8xf32>
    %81 = vector.extract_strided_slice %44 {offsets = [0, 16], sizes = [8, 8], strides = [1, 1]} : vector<8x32xf32> to vector<8x8xf32>
    %cst_37 = arith.constant dense<0.000000e+00> : vector<8x8xf32>
    %82 = tpu.matmul %80, %81, %cst_37 {dimension_numbers = #tpu.dot_dimension_numbers<[1], [1], [0], [0], [0, 0, 1, 0], [], []>} : vector<8x8xf32>, vector<8x8xf32>, vector<8x8xf32> -> vector<8x8xf32>
    %83 = arith.addf %82, %11 : vector<8x8xf32>
    %cst_38 = arith.constant dense<0xFF800000> : vector<8xf32>
    %84 = vector.multi_reduction <maximumf>, %83, %cst_38 [1] : vector<8x8xf32> to vector<8xf32>
    %85 = vector.shape_cast %84 : vector<8xf32> to vector<8x1xf32>
    %86 = vector.broadcast %85 : vector<8x1xf32> to vector<8x8xf32>
    %87 = arith.subf %83, %86 : vector<8x8xf32>
    %88 = math.exp %87 : vector<8x8xf32>
    %cst_39 = arith.constant dense<0.000000e+00> : vector<8xf32>
    %89 = vector.multi_reduction <add>, %88, %cst_39 [1] : vector<8x8xf32> to vector<8xf32>
    %90 = vector.shape_cast %89 : vector<8xf32> to vector<8x1xf32>
    %91 = tpu.reciprocal %90 {approx = true} : vector<8x1xf32> -> vector<8x1xf32>
    %92 = vector.broadcast %91 : vector<8x1xf32> to vector<8x8xf32>
    %93 = arith.mulf %88, %92 : vector<8x8xf32>
    %94 = vector.extract_strided_slice %45 {offsets = [0, 16], sizes = [8, 8], strides = [1, 1]} : vector<8x32xf32> to vector<8x8xf32>
    %cst_40 = arith.constant dense<0.000000e+00> : vector<8x8xf32>
    %95 = tpu.matmul %93, %94, %cst_40 {dimension_numbers = #tpu.dot_dimension_numbers<[1], [0], [0], [1], [0, 0, 1, 1], [], []>} : vector<8x8xf32>, vector<8x8xf32>, vector<8x8xf32> -> vector<8x8xf32>
    %c0_41 = arith.constant 0 : index
    %c16 = arith.constant 16 : index
    %96 = vector.load %arg21[%c0_41, %c16] : memref<8x32xf32, #tpu.memory_space<vmem>>, vector<8x8xf32>
    tpu.vector_store %arg21[%c0_41, %c16], %95 {strides = array<i32>} : memref<8x32xf32, #tpu.memory_space<vmem>>, vector<8x8xf32>,
    %97 = vector.extract_strided_slice %43 {offsets = [0, 24], sizes = [8, 8], strides = [1, 1]} : vector<8x32xf32> to vector<8x8xf32>
    %98 = vector.extract_strided_slice %44 {offsets = [0, 24], sizes = [8, 8], strides = [1, 1]} : vector<8x32xf32> to vector<8x8xf32>
    %cst_42 = arith.constant dense<0.000000e+00> : vector<8x8xf32>
    %99 = tpu.matmul %97, %98, %cst_42 {dimension_numbers = #tpu.dot_dimension_numbers<[1], [1], [0], [0], [0, 0, 1, 0], [], []>} : vector<8x8xf32>, vector<8x8xf32>, vector<8x8xf32> -> vector<8x8xf32>
    %100 = arith.addf %99, %11 : vector<8x8xf32>
    %cst_43 = arith.constant dense<0xFF800000> : vector<8xf32>
    %101 = vector.multi_reduction <maximumf>, %100, %cst_43 [1] : vector<8x8xf32> to vector<8xf32>
    %102 = vector.shape_cast %101 : vector<8xf32> to vector<8x1xf32>
    %103 = vector.broadcast %102 : vector<8x1xf32> to vector<8x8xf32>
    %104 = arith.subf %100, %103 : vector<8x8xf32>
    %105 = math.exp %104 : vector<8x8xf32>
    %cst_44 = arith.constant dense<0.000000e+00> : vector<8xf32>
    %106 = vector.multi_reduction <add>, %105, %cst_44 [1] : vector<8x8xf32> to vector<8xf32>
    %107 = vector.shape_cast %106 : vector<8xf32> to vector<8x1xf32>
    %108 = tpu.reciprocal %107 {approx = true} : vector<8x1xf32> -> vector<8x1xf32>
    %109 = vector.broadcast %108 : vector<8x1xf32> to vector<8x8xf32>
    %110 = arith.mulf %105, %109 : vector<8x8xf32>
    %111 = vector.extract_strided_slice %45 {offsets = [0, 24], sizes = [8, 8], strides = [1, 1]} : vector<8x32xf32> to vector<8x8xf32>
    %cst_45 = arith.constant dense<0.000000e+00> : vector<8x8xf32>
    %112 = tpu.matmul %110, %111, %cst_45 {dimension_numbers = #tpu.dot_dimension_numbers<[1], [0], [0], [1], [0, 0, 1, 1], [], []>} : vector<8x8xf32>, vector<8x8xf32>, vector<8x8xf32> -> vector<8x8xf32>
    %c0_46 = arith.constant 0 : index
    %c24 = arith.constant 24 : index
    %113 = vector.load %arg21[%c0_46, %c24] : memref<8x32xf32, #tpu.memory_space<vmem>>, vector<8x8xf32>
    tpu.vector_store %arg21[%c0_46, %c24], %112 {strides = array<i32>} : memref<8x32xf32, #tpu.memory_space<vmem>>, vector<8x8xf32>,
    %c0_47 = arith.constant 0 : index
    %c0_48 = arith.constant 0 : index
    %114 = vector.load %arg21[%c0_47, %c0_48] : memref<8x32xf32, #tpu.memory_space<vmem>>, vector<8x32xf32>
    %c0_49 = arith.constant 0 : index
    %c0_50 = arith.constant 0 : index
    %c0_51 = arith.constant 0 : index
    %115 = vector.load %arg8[%c0_49, %c0_50, %c0_51] : memref<2x32x32xf32, #tpu.memory_space<vmem>>, vector<1x32x32xf32>
    %116 = vector.shape_cast %115 : vector<1x32x32xf32> to vector<32x32xf32>
    %cst_52 = arith.constant dense<0.000000e+00> : vector<8x32xf32>
    %117 = tpu.matmul %114, %116, %cst_52 {dimension_numbers = #tpu.dot_dimension_numbers<[1], [0], [0], [1], [0, 0, 1, 1], [], []>} : vector<8x32xf32>, vector<32x32xf32>, vector<8x32xf32> -> vector<8x32xf32>
    %c0_53 = arith.constant 0 : index
    %c0_54 = arith.constant 0 : index
    %c0_55 = arith.constant 0 : index
    %118 = vector.load %arg9[%c0_53, %c0_54, %c0_55] : memref<2x1x32xf32, #tpu.memory_space<vmem>>, vector<1x1x32xf32>
    %119 = vector.shape_cast %118 : vector<1x1x32xf32> to vector<1x32xf32>
    %120 = vector.broadcast %119 : vector<1x32xf32> to vector<8x32xf32>
    %121 = arith.addf %117, %120 : vector<8x32xf32>
    %122 = arith.addf %5, %121 : vector<8x32xf32>
    %c0_56 = arith.constant 0 : index
    %c0_57 = arith.constant 0 : index
    %c0_58 = arith.constant 0 : index
    %123 = vector.load %arg10[%c0_56, %c0_57, %c0_58] : memref<2x1x32xf32, #tpu.memory_space<vmem>>, vector<1x1x32xf32>
    %124 = vector.shape_cast %123 : vector<1x1x32xf32> to vector<1x32xf32>
    %c0_59 = arith.constant 0 : index
    %c0_60 = arith.constant 0 : index
    %c0_61 = arith.constant 0 : index
    %125 = vector.load %arg11[%c0_59, %c0_60, %c0_61] : memref<2x1x32xf32, #tpu.memory_space<vmem>>, vector<1x1x32xf32>
    %126 = vector.shape_cast %125 : vector<1x1x32xf32> to vector<1x32xf32>
    %cst_62 = arith.constant dense<0.000000e+00> : vector<8xf32>
    %127 = vector.multi_reduction <add>, %122, %cst_62 [1] : vector<8x32xf32> to vector<8xf32>
    %128 = vector.shape_cast %127 : vector<8xf32> to vector<8x1xf32>
    %cst_63 = arith.constant 3.200000e+01 : f32
    %129 = vector.broadcast %cst_63 : f32 to vector<8x1xf32>
    %130 = arith.divf %128, %129 : vector<8x1xf32>
    %131 = vector.broadcast %130 : vector<8x1xf32> to vector<8x32xf32>
    %132 = arith.subf %122, %131 : vector<8x32xf32>
    %133 = arith.mulf %132, %132 : vector<8x32xf32>
    %cst_64 = arith.constant dense<0.000000e+00> : vector<8xf32>
    %134 = vector.multi_reduction <add>, %133, %cst_64 [1] : vector<8x32xf32> to vector<8xf32>
    %135 = vector.shape_cast %134 : vector<8xf32> to vector<8x1xf32>
    %cst_65 = arith.constant 3.200000e+01 : f32
    %136 = vector.broadcast %cst_65 : f32 to vector<8x1xf32>
    %137 = arith.divf %135, %136 : vector<8x1xf32>
    %cst_66 = arith.constant 9.99999997E-7 : f32
    %138 = vector.broadcast %cst_66 : f32 to vector<8x1xf32>
    %139 = arith.addf %137, %138 : vector<8x1xf32>
    %140 = math.rsqrt %139 : vector<8x1xf32>
    %141 = vector.broadcast %140 : vector<8x1xf32> to vector<8x32xf32>
    %142 = arith.mulf %132, %141 : vector<8x32xf32>
    %143 = vector.broadcast %124 : vector<1x32xf32> to vector<8x32xf32>
    %144 = arith.mulf %142, %143 : vector<8x32xf32>
    %145 = vector.broadcast %126 : vector<1x32xf32> to vector<8x32xf32>
    %146 = arith.addf %144, %145 : vector<8x32xf32>
    %c0_67 = arith.constant 0 : index
    %c0_68 = arith.constant 0 : index
    %c0_69 = arith.constant 0 : index
    %147 = vector.load %arg12[%c0_67, %c0_68, %c0_69] : memref<2x32x64xf32, #tpu.memory_space<vmem>>, vector<1x32x64xf32>
    %148 = vector.shape_cast %147 : vector<1x32x64xf32> to vector<32x64xf32>
    %cst_70 = arith.constant dense<0.000000e+00> : vector<8x64xf32>
    %149 = tpu.matmul %146, %148, %cst_70 {dimension_numbers = #tpu.dot_dimension_numbers<[1], [0], [0], [1], [0, 0, 1, 1], [], []>} : vector<8x32xf32>, vector<32x64xf32>, vector<8x64xf32> -> vector<8x64xf32>
    %c0_71 = arith.constant 0 : index
    %c0_72 = arith.constant 0 : index
    %c0_73 = arith.constant 0 : index
    %150 = vector.load %arg13[%c0_71, %c0_72, %c0_73] : memref<2x1x64xf32, #tpu.memory_space<vmem>>, vector<1x1x64xf32>
    %151 = vector.shape_cast %150 : vector<1x1x64xf32> to vector<1x64xf32>
    %152 = vector.broadcast %151 : vector<1x64xf32> to vector<8x64xf32>
    %153 = arith.addf %149, %152 : vector<8x64xf32>
    %cst_74 = arith.constant 5.000000e-01 : f32
    %154 = vector.broadcast %cst_74 : f32 to vector<8x64xf32>
    %155 = arith.mulf %154, %153 : vector<8x64xf32>
    %cst_75 = arith.constant 0.707106769 : f32
    %156 = vector.broadcast %cst_75 : f32 to vector<8x64xf32>
    %157 = arith.mulf %153, %156 : vector<8x64xf32>
    %cst_76 = arith.constant 0.000000e+00 : f32
    %158 = vector.broadcast %cst_76 : f32 to vector<8x64xf32>
    %159 = arith.cmpf oge, %157, %158 : vector<8x64xf32>
    %cst_77 = arith.constant 1.000000e+00 : f32
    %cst_78 = arith.constant -1.000000e+00 : f32
    %160 = vector.broadcast %cst_77 : f32 to vector<8x64xf32>
    %161 = vector.broadcast %cst_78 : f32 to vector<8x64xf32>
    %162 = arith.select %159, %160, %161 : vector<8x64xi1>, vector<8x64xf32>
    %163 = math.absf %157 : vector<8x64xf32>
    %cst_79 = arith.constant 0.327591091 : f32
    %164 = vector.broadcast %cst_79 : f32 to vector<8x64xf32>
    %165 = arith.mulf %164, %163 : vector<8x64xf32>
    %cst_80 = arith.constant 1.000000e+00 : f32
    %166 = vector.broadcast %cst_80 : f32 to vector<8x64xf32>
    %167 = arith.addf %166, %165 : vector<8x64xf32>
    %cst_81 = arith.constant 1.000000e+00 : f32
    %168 = vector.broadcast %cst_81 : f32 to vector<8x64xf32>
    %169 = arith.divf %168, %167 : vector<8x64xf32>
    %cst_82 = arith.constant 1.06140542 : f32
    %170 = vector.broadcast %cst_82 : f32 to vector<8x64xf32>
    %171 = arith.mulf %170, %169 : vector<8x64xf32>
    %cst_83 = arith.constant -1.45315206 : f32
    %172 = vector.broadcast %cst_83 : f32 to vector<8x64xf32>
    %173 = arith.addf %171, %172 : vector<8x64xf32>
    %174 = arith.mulf %173, %169 : vector<8x64xf32>
    %cst_84 = arith.constant 1.42141378 : f32
    %175 = vector.broadcast %cst_84 : f32 to vector<8x64xf32>
    %176 = arith.addf %174, %175 : vector<8x64xf32>
    %177 = arith.mulf %176, %169 : vector<8x64xf32>
    %cst_85 = arith.constant -0.284496725 : f32
    %178 = vector.broadcast %cst_85 : f32 to vector<8x64xf32>
    %179 = arith.addf %177, %178 : vector<8x64xf32>
    %180 = arith.mulf %179, %169 : vector<8x64xf32>
    %cst_86 = arith.constant 0.254829586 : f32
    %181 = vector.broadcast %cst_86 : f32 to vector<8x64xf32>
    %182 = arith.addf %180, %181 : vector<8x64xf32>
    %183 = arith.mulf %182, %169 : vector<8x64xf32>
    %cst_87 = arith.constant 0.000000e+00 : f32
    %184 = vector.broadcast %cst_87 : f32 to vector<8x64xf32>
    %185 = arith.subf %184, %163 : vector<8x64xf32>
    %186 = arith.mulf %185, %163 : vector<8x64xf32>
    %187 = math.exp %186 : vector<8x64xf32>
    %188 = arith.mulf %183, %187 : vector<8x64xf32>
    %cst_88 = arith.constant 1.000000e+00 : f32
    %189 = vector.broadcast %cst_88 : f32 to vector<8x64xf32>
    %190 = arith.subf %189, %188 : vector<8x64xf32>
    %191 = arith.mulf %162, %190 : vector<8x64xf32>
    %cst_89 = arith.constant 1.000000e+00 : f32
    %192 = vector.broadcast %cst_89 : f32 to vector<8x64xf32>
    %193 = arith.addf %192, %191 : vector<8x64xf32>
    %194 = arith.mulf %155, %193 : vector<8x64xf32>
    %c0_90 = arith.constant 0 : index
    %c0_91 = arith.constant 0 : index
    %c0_92 = arith.constant 0 : index
    %195 = vector.load %arg14[%c0_90, %c0_91, %c0_92] : memref<2x64x32xf32, #tpu.memory_space<vmem>>, vector<1x64x32xf32>
    %196 = vector.shape_cast %195 : vector<1x64x32xf32> to vector<64x32xf32>
    %cst_93 = arith.constant dense<0.000000e+00> : vector<8x32xf32>
    %197 = tpu.matmul %194, %196, %cst_93 {dimension_numbers = #tpu.dot_dimension_numbers<[1], [0], [0], [1], [0, 0, 1, 1], [], []>} : vector<8x64xf32>, vector<64x32xf32>, vector<8x32xf32> -> vector<8x32xf32>
    %198 = arith.addf %122, %197 : vector<8x32xf32>
    %c0_94 = arith.constant 0 : index
    %c0_95 = arith.constant 0 : index
    %c0_96 = arith.constant 0 : index
    %199 = vector.load %arg15[%c0_94, %c0_95, %c0_96] : memref<2x1x32xf32, #tpu.memory_space<vmem>>, vector<1x1x32xf32>
    %200 = vector.shape_cast %199 : vector<1x1x32xf32> to vector<1x32xf32>
    %201 = vector.broadcast %200 : vector<1x32xf32> to vector<8x32xf32>
    %202 = arith.addf %198, %201 : vector<8x32xf32>
    %c1 = arith.constant 1 : index
    %c0_97 = arith.constant 0 : index
    %c0_98 = arith.constant 0 : index
    %203 = vector.load %arg4[%c1, %c0_97, %c0_98] : memref<2x1x32xf32, #tpu.memory_space<vmem>>, vector<1x1x32xf32>
    %204 = vector.shape_cast %203 : vector<1x1x32xf32> to vector<1x32xf32>
    %c1_99 = arith.constant 1 : index
    %c0_100 = arith.constant 0 : index
    %c0_101 = arith.constant 0 : index
    %205 = vector.load %arg5[%c1_99, %c0_100, %c0_101] : memref<2x1x32xf32, #tpu.memory_space<vmem>>, vector<1x1x32xf32>
    %206 = vector.shape_cast %205 : vector<1x1x32xf32> to vector<1x32xf32>
    %cst_102 = arith.constant dense<0.000000e+00> : vector<8xf32>
    %207 = vector.multi_reduction <add>, %202, %cst_102 [1] : vector<8x32xf32> to vector<8xf32>
    %208 = vector.shape_cast %207 : vector<8xf32> to vector<8x1xf32>
    %cst_103 = arith.constant 3.200000e+01 : f32
    %209 = vector.broadcast %cst_103 : f32 to vector<8x1xf32>
    %210 = arith.divf %208, %209 : vector<8x1xf32>
    %211 = vector.broadcast %210 : vector<8x1xf32> to vector<8x32xf32>
    %212 = arith.subf %202, %211 : vector<8x32xf32>
    %213 = arith.mulf %212, %212 : vector<8x32xf32>
    %cst_104 = arith.constant dense<0.000000e+00> : vector<8xf32>
    %214 = vector.multi_reduction <add>, %213, %cst_104 [1] : vector<8x32xf32> to vector<8xf32>
    %215 = vector.shape_cast %214 : vector<8xf32> to vector<8x1xf32>
    %cst_105 = arith.constant 3.200000e+01 : f32
    %216 = vector.broadcast %cst_105 : f32 to vector<8x1xf32>
    %217 = arith.divf %215, %216 : vector<8x1xf32>
    %cst_106 = arith.constant 9.99999997E-7 : f32
    %218 = vector.broadcast %cst_106 : f32 to vector<8x1xf32>
    %219 = arith.addf %217, %218 : vector<8x1xf32>
    %220 = math.rsqrt %219 : vector<8x1xf32>
    %221 = vector.broadcast %220 : vector<8x1xf32> to vector<8x32xf32>
    %222 = arith.mulf %212, %221 : vector<8x32xf32>
    %223 = vector.broadcast %204 : vector<1x32xf32> to vector<8x32xf32>
    %224 = arith.mulf %222, %223 : vector<8x32xf32>
    %225 = vector.broadcast %206 : vector<1x32xf32> to vector<8x32xf32>
    %226 = arith.addf %224, %225 : vector<8x32xf32>
    %c1_107 = arith.constant 1 : index
    %c0_108 = arith.constant 0 : index
    %c0_109 = arith.constant 0 : index
    %227 = vector.load %arg6[%c1_107, %c0_108, %c0_109] : memref<2x32x96xf32, #tpu.memory_space<vmem>>, vector<1x32x96xf32>
    %228 = vector.shape_cast %227 : vector<1x32x96xf32> to vector<32x96xf32>
    %cst_110 = arith.constant dense<0.000000e+00> : vector<8x96xf32>
    %229 = tpu.matmul %226, %228, %cst_110 {dimension_numbers = #tpu.dot_dimension_numbers<[1], [0], [0], [1], [0, 0, 1, 1], [], []>} : vector<8x32xf32>, vector<32x96xf32>, vector<8x96xf32> -> vector<8x96xf32>
    %c1_111 = arith.constant 1 : index
    %c0_112 = arith.constant 0 : index
    %c0_113 = arith.constant 0 : index
    %230 = vector.load %arg7[%c1_111, %c0_112, %c0_113] : memref<2x1x96xf32, #tpu.memory_space<vmem>>, vector<1x1x96xf32>
    %231 = vector.shape_cast %230 : vector<1x1x96xf32> to vector<1x96xf32>
    %232 = vector.broadcast %231 : vector<1x96xf32> to vector<8x96xf32>
    %233 = arith.addf %229, %232 : vector<8x96xf32>
    %234 = vector.extract_strided_slice %233 {offsets = [0, 0], sizes = [8, 32], strides = [1, 1]} : vector<8x96xf32> to vector<8x32xf32>
    %235 = vector.extract_strided_slice %233 {offsets = [0, 32], sizes = [8, 32], strides = [1, 1]} : vector<8x96xf32> to vector<8x32xf32>
    %236 = vector.extract_strided_slice %233 {offsets = [0, 64], sizes = [8, 32], strides = [1, 1]} : vector<8x96xf32> to vector<8x32xf32>
    %237 = vector.extract_strided_slice %234 {offsets = [0, 0], sizes = [8, 8], strides = [1, 1]} : vector<8x32xf32> to vector<8x8xf32>
    %238 = vector.extract_strided_slice %235 {offsets = [0, 0], sizes = [8, 8], strides = [1, 1]} : vector<8x32xf32> to vector<8x8xf32>
    %cst_114 = arith.constant dense<0.000000e+00> : vector<8x8xf32>
    %239 = tpu.matmul %237, %238, %cst_114 {dimension_numbers = #tpu.dot_dimension_numbers<[1], [1], [0], [0], [0, 0, 1, 0], [], []>} : vector<8x8xf32>, vector<8x8xf32>, vector<8x8xf32> -> vector<8x8xf32>
    %240 = arith.addf %239, %11 : vector<8x8xf32>
    %cst_115 = arith.constant dense<0xFF800000> : vector<8xf32>
    %241 = vector.multi_reduction <maximumf>, %240, %cst_115 [1] : vector<8x8xf32> to vector<8xf32>
    %242 = vector.shape_cast %241 : vector<8xf32> to vector<8x1xf32>
    %243 = vector.broadcast %242 : vector<8x1xf32> to vector<8x8xf32>
    %244 = arith.subf %240, %243 : vector<8x8xf32>
    %245 = math.exp %244 : vector<8x8xf32>
    %cst_116 = arith.constant dense<0.000000e+00> : vector<8xf32>
    %246 = vector.multi_reduction <add>, %245, %cst_116 [1] : vector<8x8xf32> to vector<8xf32>
    %247 = vector.shape_cast %246 : vector<8xf32> to vector<8x1xf32>
    %248 = tpu.reciprocal %247 {approx = true} : vector<8x1xf32> -> vector<8x1xf32>
    %249 = vector.broadcast %248 : vector<8x1xf32> to vector<8x8xf32>
    %250 = arith.mulf %245, %249 : vector<8x8xf32>
    %251 = vector.extract_strided_slice %236 {offsets = [0, 0], sizes = [8, 8], strides = [1, 1]} : vector<8x32xf32> to vector<8x8xf32>
    %cst_117 = arith.constant dense<0.000000e+00> : vector<8x8xf32>
    %252 = tpu.matmul %250, %251, %cst_117 {dimension_numbers = #tpu.dot_dimension_numbers<[1], [0], [0], [1], [0, 0, 1, 1], [], []>} : vector<8x8xf32>, vector<8x8xf32>, vector<8x8xf32> -> vector<8x8xf32>
    %c0_118 = arith.constant 0 : index
    %c0_119 = arith.constant 0 : index
    %253 = vector.load %arg21[%c0_118, %c0_119] : memref<8x32xf32, #tpu.memory_space<vmem>>, vector<8x8xf32>
    tpu.vector_store %arg21[%c0_118, %c0_119], %252 {strides = array<i32>} : memref<8x32xf32, #tpu.memory_space<vmem>>, vector<8x8xf32>,
    %254 = vector.extract_strided_slice %234 {offsets = [0, 8], sizes = [8, 8], strides = [1, 1]} : vector<8x32xf32> to vector<8x8xf32>
    %255 = vector.extract_strided_slice %235 {offsets = [0, 8], sizes = [8, 8], strides = [1, 1]} : vector<8x32xf32> to vector<8x8xf32>
    %cst_120 = arith.constant dense<0.000000e+00> : vector<8x8xf32>
    %256 = tpu.matmul %254, %255, %cst_120 {dimension_numbers = #tpu.dot_dimension_numbers<[1], [1], [0], [0], [0, 0, 1, 0], [], []>} : vector<8x8xf32>, vector<8x8xf32>, vector<8x8xf32> -> vector<8x8xf32>
    %257 = arith.addf %256, %11 : vector<8x8xf32>
    %cst_121 = arith.constant dense<0xFF800000> : vector<8xf32>
    %258 = vector.multi_reduction <maximumf>, %257, %cst_121 [1] : vector<8x8xf32> to vector<8xf32>
    %259 = vector.shape_cast %258 : vector<8xf32> to vector<8x1xf32>
    %260 = vector.broadcast %259 : vector<8x1xf32> to vector<8x8xf32>
    %261 = arith.subf %257, %260 : vector<8x8xf32>
    %262 = math.exp %261 : vector<8x8xf32>
    %cst_122 = arith.constant dense<0.000000e+00> : vector<8xf32>
    %263 = vector.multi_reduction <add>, %262, %cst_122 [1] : vector<8x8xf32> to vector<8xf32>
    %264 = vector.shape_cast %263 : vector<8xf32> to vector<8x1xf32>
    %265 = tpu.reciprocal %264 {approx = true} : vector<8x1xf32> -> vector<8x1xf32>
    %266 = vector.broadcast %265 : vector<8x1xf32> to vector<8x8xf32>
    %267 = arith.mulf %262, %266 : vector<8x8xf32>
    %268 = vector.extract_strided_slice %236 {offsets = [0, 8], sizes = [8, 8], strides = [1, 1]} : vector<8x32xf32> to vector<8x8xf32>
    %cst_123 = arith.constant dense<0.000000e+00> : vector<8x8xf32>
    %269 = tpu.matmul %267, %268, %cst_123 {dimension_numbers = #tpu.dot_dimension_numbers<[1], [0], [0], [1], [0, 0, 1, 1], [], []>} : vector<8x8xf32>, vector<8x8xf32>, vector<8x8xf32> -> vector<8x8xf32>
    %c0_124 = arith.constant 0 : index
    %c8_125 = arith.constant 8 : index
    %270 = vector.load %arg21[%c0_124, %c8_125] : memref<8x32xf32, #tpu.memory_space<vmem>>, vector<8x8xf32>
    tpu.vector_store %arg21[%c0_124, %c8_125], %269 {strides = array<i32>} : memref<8x32xf32, #tpu.memory_space<vmem>>, vector<8x8xf32>,
    %271 = vector.extract_strided_slice %234 {offsets = [0, 16], sizes = [8, 8], strides = [1, 1]} : vector<8x32xf32> to vector<8x8xf32>
    %272 = vector.extract_strided_slice %235 {offsets = [0, 16], sizes = [8, 8], strides = [1, 1]} : vector<8x32xf32> to vector<8x8xf32>
    %cst_126 = arith.constant dense<0.000000e+00> : vector<8x8xf32>
    %273 = tpu.matmul %271, %272, %cst_126 {dimension_numbers = #tpu.dot_dimension_numbers<[1], [1], [0], [0], [0, 0, 1, 0], [], []>} : vector<8x8xf32>, vector<8x8xf32>, vector<8x8xf32> -> vector<8x8xf32>
    %274 = arith.addf %273, %11 : vector<8x8xf32>
    %cst_127 = arith.constant dense<0xFF800000> : vector<8xf32>
    %275 = vector.multi_reduction <maximumf>, %274, %cst_127 [1] : vector<8x8xf32> to vector<8xf32>
    %276 = vector.shape_cast %275 : vector<8xf32> to vector<8x1xf32>
    %277 = vector.broadcast %276 : vector<8x1xf32> to vector<8x8xf32>
    %278 = arith.subf %274, %277 : vector<8x8xf32>
    %279 = math.exp %278 : vector<8x8xf32>
    %cst_128 = arith.constant dense<0.000000e+00> : vector<8xf32>
    %280 = vector.multi_reduction <add>, %279, %cst_128 [1] : vector<8x8xf32> to vector<8xf32>
    %281 = vector.shape_cast %280 : vector<8xf32> to vector<8x1xf32>
    %282 = tpu.reciprocal %281 {approx = true} : vector<8x1xf32> -> vector<8x1xf32>
    %283 = vector.broadcast %282 : vector<8x1xf32> to vector<8x8xf32>
    %284 = arith.mulf %279, %283 : vector<8x8xf32>
    %285 = vector.extract_strided_slice %236 {offsets = [0, 16], sizes = [8, 8], strides = [1, 1]} : vector<8x32xf32> to vector<8x8xf32>
    %cst_129 = arith.constant dense<0.000000e+00> : vector<8x8xf32>
    %286 = tpu.matmul %284, %285, %cst_129 {dimension_numbers = #tpu.dot_dimension_numbers<[1], [0], [0], [1], [0, 0, 1, 1], [], []>} : vector<8x8xf32>, vector<8x8xf32>, vector<8x8xf32> -> vector<8x8xf32>
    %c0_130 = arith.constant 0 : index
    %c16_131 = arith.constant 16 : index
    %287 = vector.load %arg21[%c0_130, %c16_131] : memref<8x32xf32, #tpu.memory_space<vmem>>, vector<8x8xf32>
    tpu.vector_store %arg21[%c0_130, %c16_131], %286 {strides = array<i32>} : memref<8x32xf32, #tpu.memory_space<vmem>>, vector<8x8xf32>,
    %288 = vector.extract_strided_slice %234 {offsets = [0, 24], sizes = [8, 8], strides = [1, 1]} : vector<8x32xf32> to vector<8x8xf32>
    %289 = vector.extract_strided_slice %235 {offsets = [0, 24], sizes = [8, 8], strides = [1, 1]} : vector<8x32xf32> to vector<8x8xf32>
    %cst_132 = arith.constant dense<0.000000e+00> : vector<8x8xf32>
    %290 = tpu.matmul %288, %289, %cst_132 {dimension_numbers = #tpu.dot_dimension_numbers<[1], [1], [0], [0], [0, 0, 1, 0], [], []>} : vector<8x8xf32>, vector<8x8xf32>, vector<8x8xf32> -> vector<8x8xf32>
    %291 = arith.addf %290, %11 : vector<8x8xf32>
    %cst_133 = arith.constant dense<0xFF800000> : vector<8xf32>
    %292 = vector.multi_reduction <maximumf>, %291, %cst_133 [1] : vector<8x8xf32> to vector<8xf32>
    %293 = vector.shape_cast %292 : vector<8xf32> to vector<8x1xf32>
    %294 = vector.broadcast %293 : vector<8x1xf32> to vector<8x8xf32>
    %295 = arith.subf %291, %294 : vector<8x8xf32>
    %296 = math.exp %295 : vector<8x8xf32>
    %cst_134 = arith.constant dense<0.000000e+00> : vector<8xf32>
    %297 = vector.multi_reduction <add>, %296, %cst_134 [1] : vector<8x8xf32> to vector<8xf32>
    %298 = vector.shape_cast %297 : vector<8xf32> to vector<8x1xf32>
    %299 = tpu.reciprocal %298 {approx = true} : vector<8x1xf32> -> vector<8x1xf32>
    %300 = vector.broadcast %299 : vector<8x1xf32> to vector<8x8xf32>
    %301 = arith.mulf %296, %300 : vector<8x8xf32>
    %302 = vector.extract_strided_slice %236 {offsets = [0, 24], sizes = [8, 8], strides = [1, 1]} : vector<8x32xf32> to vector<8x8xf32>
    %cst_135 = arith.constant dense<0.000000e+00> : vector<8x8xf32>
    %303 = tpu.matmul %301, %302, %cst_135 {dimension_numbers = #tpu.dot_dimension_numbers<[1], [0], [0], [1], [0, 0, 1, 1], [], []>} : vector<8x8xf32>, vector<8x8xf32>, vector<8x8xf32> -> vector<8x8xf32>
    %c0_136 = arith.constant 0 : index
    %c24_137 = arith.constant 24 : index
    %304 = vector.load %arg21[%c0_136, %c24_137] : memref<8x32xf32, #tpu.memory_space<vmem>>, vector<8x8xf32>
    tpu.vector_store %arg21[%c0_136, %c24_137], %303 {strides = array<i32>} : memref<8x32xf32, #tpu.memory_space<vmem>>, vector<8x8xf32>,
    %c0_138 = arith.constant 0 : index
    %c0_139 = arith.constant 0 : index
    %305 = vector.load %arg21[%c0_138, %c0_139] : memref<8x32xf32, #tpu.memory_space<vmem>>, vector<8x32xf32>
    %c1_140 = arith.constant 1 : index
    %c0_141 = arith.constant 0 : index
    %c0_142 = arith.constant 0 : index
    %306 = vector.load %arg8[%c1_140, %c0_141, %c0_142] : memref<2x32x32xf32, #tpu.memory_space<vmem>>, vector<1x32x32xf32>
    %307 = vector.shape_cast %306 : vector<1x32x32xf32> to vector<32x32xf32>
    %cst_143 = arith.constant dense<0.000000e+00> : vector<8x32xf32>
    %308 = tpu.matmul %305, %307, %cst_143 {dimension_numbers = #tpu.dot_dimension_numbers<[1], [0], [0], [1], [0, 0, 1, 1], [], []>} : vector<8x32xf32>, vector<32x32xf32>, vector<8x32xf32> -> vector<8x32xf32>
    %c1_144 = arith.constant 1 : index
    %c0_145 = arith.constant 0 : index
    %c0_146 = arith.constant 0 : index
    %309 = vector.load %arg9[%c1_144, %c0_145, %c0_146] : memref<2x1x32xf32, #tpu.memory_space<vmem>>, vector<1x1x32xf32>
    %310 = vector.shape_cast %309 : vector<1x1x32xf32> to vector<1x32xf32>
    %311 = vector.broadcast %310 : vector<1x32xf32> to vector<8x32xf32>
    %312 = arith.addf %308, %311 : vector<8x32xf32>
    %313 = arith.addf %202, %312 : vector<8x32xf32>
    %c1_147 = arith.constant 1 : index
    %c0_148 = arith.constant 0 : index
    %c0_149 = arith.constant 0 : index
    %314 = vector.load %arg10[%c1_147, %c0_148, %c0_149] : memref<2x1x32xf32, #tpu.memory_space<vmem>>, vector<1x1x32xf32>
    %315 = vector.shape_cast %314 : vector<1x1x32xf32> to vector<1x32xf32>
    %c1_150 = arith.constant 1 : index
    %c0_151 = arith.constant 0 : index
    %c0_152 = arith.constant 0 : index
    %316 = vector.load %arg11[%c1_150, %c0_151, %c0_152] : memref<2x1x32xf32, #tpu.memory_space<vmem>>, vector<1x1x32xf32>
    %317 = vector.shape_cast %316 : vector<1x1x32xf32> to vector<1x32xf32>
    %cst_153 = arith.constant dense<0.000000e+00> : vector<8xf32>
    %318 = vector.multi_reduction <add>, %313, %cst_153 [1] : vector<8x32xf32> to vector<8xf32>
    %319 = vector.shape_cast %318 : vector<8xf32> to vector<8x1xf32>
    %cst_154 = arith.constant 3.200000e+01 : f32
    %320 = vector.broadcast %cst_154 : f32 to vector<8x1xf32>
    %321 = arith.divf %319, %320 : vector<8x1xf32>
    %322 = vector.broadcast %321 : vector<8x1xf32> to vector<8x32xf32>
    %323 = arith.subf %313, %322 : vector<8x32xf32>
    %324 = arith.mulf %323, %323 : vector<8x32xf32>
    %cst_155 = arith.constant dense<0.000000e+00> : vector<8xf32>
    %325 = vector.multi_reduction <add>, %324, %cst_155 [1] : vector<8x32xf32> to vector<8xf32>
    %326 = vector.shape_cast %325 : vector<8xf32> to vector<8x1xf32>
    %cst_156 = arith.constant 3.200000e+01 : f32
    %327 = vector.broadcast %cst_156 : f32 to vector<8x1xf32>
    %328 = arith.divf %326, %327 : vector<8x1xf32>
    %cst_157 = arith.constant 9.99999997E-7 : f32
    %329 = vector.broadcast %cst_157 : f32 to vector<8x1xf32>
    %330 = arith.addf %328, %329 : vector<8x1xf32>
    %331 = math.rsqrt %330 : vector<8x1xf32>
    %332 = vector.broadcast %331 : vector<8x1xf32> to vector<8x32xf32>
    %333 = arith.mulf %323, %332 : vector<8x32xf32>
    %334 = vector.broadcast %315 : vector<1x32xf32> to vector<8x32xf32>
    %335 = arith.mulf %333, %334 : vector<8x32xf32>
    %336 = vector.broadcast %317 : vector<1x32xf32> to vector<8x32xf32>
    %337 = arith.addf %335, %336 : vector<8x32xf32>
    %c1_158 = arith.constant 1 : index
    %c0_159 = arith.constant 0 : index
    %c0_160 = arith.constant 0 : index
    %338 = vector.load %arg12[%c1_158, %c0_159, %c0_160] : memref<2x32x64xf32, #tpu.memory_space<vmem>>, vector<1x32x64xf32>
    %339 = vector.shape_cast %338 : vector<1x32x64xf32> to vector<32x64xf32>
    %cst_161 = arith.constant dense<0.000000e+00> : vector<8x64xf32>
    %340 = tpu.matmul %337, %339, %cst_161 {dimension_numbers = #tpu.dot_dimension_numbers<[1], [0], [0], [1], [0, 0, 1, 1], [], []>} : vector<8x32xf32>, vector<32x64xf32>, vector<8x64xf32> -> vector<8x64xf32>
    %c1_162 = arith.constant 1 : index
    %c0_163 = arith.constant 0 : index
    %c0_164 = arith.constant 0 : index
    %341 = vector.load %arg13[%c1_162, %c0_163, %c0_164] : memref<2x1x64xf32, #tpu.memory_space<vmem>>, vector<1x1x64xf32>
    %342 = vector.shape_cast %341 : vector<1x1x64xf32> to vector<1x64xf32>
    %343 = vector.broadcast %342 : vector<1x64xf32> to vector<8x64xf32>
    %344 = arith.addf %340, %343 : vector<8x64xf32>
    %cst_165 = arith.constant 5.000000e-01 : f32
    %345 = vector.broadcast %cst_165 : f32 to vector<8x64xf32>
    %346 = arith.mulf %345, %344 : vector<8x64xf32>
    %cst_166 = arith.constant 0.707106769 : f32
    %347 = vector.broadcast %cst_166 : f32 to vector<8x64xf32>
    %348 = arith.mulf %344, %347 : vector<8x64xf32>
    %cst_167 = arith.constant 0.000000e+00 : f32
    %349 = vector.broadcast %cst_167 : f32 to vector<8x64xf32>
    %350 = arith.cmpf oge, %348, %349 : vector<8x64xf32>
    %cst_168 = arith.constant 1.000000e+00 : f32
    %cst_169 = arith.constant -1.000000e+00 : f32
    %351 = vector.broadcast %cst_168 : f32 to vector<8x64xf32>
    %352 = vector.broadcast %cst_169 : f32 to vector<8x64xf32>
    %353 = arith.select %350, %351, %352 : vector<8x64xi1>, vector<8x64xf32>
    %354 = math.absf %348 : vector<8x64xf32>
    %cst_170 = arith.constant 0.327591091 : f32
    %355 = vector.broadcast %cst_170 : f32 to vector<8x64xf32>
    %356 = arith.mulf %355, %354 : vector<8x64xf32>
    %cst_171 = arith.constant 1.000000e+00 : f32
    %357 = vector.broadcast %cst_171 : f32 to vector<8x64xf32>
    %358 = arith.addf %357, %356 : vector<8x64xf32>
    %cst_172 = arith.constant 1.000000e+00 : f32
    %359 = vector.broadcast %cst_172 : f32 to vector<8x64xf32>
    %360 = arith.divf %359, %358 : vector<8x64xf32>
    %cst_173 = arith.constant 1.06140542 : f32
    %361 = vector.broadcast %cst_173 : f32 to vector<8x64xf32>
    %362 = arith.mulf %361, %360 : vector<8x64xf32>
    %cst_174 = arith.constant -1.45315206 : f32
    %363 = vector.broadcast %cst_174 : f32 to vector<8x64xf32>
    %364 = arith.addf %362, %363 : vector<8x64xf32>
    %365 = arith.mulf %364, %360 : vector<8x64xf32>
    %cst_175 = arith.constant 1.42141378 : f32
    %366 = vector.broadcast %cst_175 : f32 to vector<8x64xf32>
    %367 = arith.addf %365, %366 : vector<8x64xf32>
    %368 = arith.mulf %367, %360 : vector<8x64xf32>
    %cst_176 = arith.constant -0.284496725 : f32
    %369 = vector.broadcast %cst_176 : f32 to vector<8x64xf32>
    %370 = arith.addf %368, %369 : vector<8x64xf32>
    %371 = arith.mulf %370, %360 : vector<8x64xf32>
    %cst_177 = arith.constant 0.254829586 : f32
    %372 = vector.broadcast %cst_177 : f32 to vector<8x64xf32>
    %373 = arith.addf %371, %372 : vector<8x64xf32>
    %374 = arith.mulf %373, %360 : vector<8x64xf32>
    %cst_178 = arith.constant 0.000000e+00 : f32
    %375 = vector.broadcast %cst_178 : f32 to vector<8x64xf32>
    %376 = arith.subf %375, %354 : vector<8x64xf32>
    %377 = arith.mulf %376, %354 : vector<8x64xf32>
    %378 = math.exp %377 : vector<8x64xf32>
    %379 = arith.mulf %374, %378 : vector<8x64xf32>
    %cst_179 = arith.constant 1.000000e+00 : f32
    %380 = vector.broadcast %cst_179 : f32 to vector<8x64xf32>
    %381 = arith.subf %380, %379 : vector<8x64xf32>
    %382 = arith.mulf %353, %381 : vector<8x64xf32>
    %cst_180 = arith.constant 1.000000e+00 : f32
    %383 = vector.broadcast %cst_180 : f32 to vector<8x64xf32>
    %384 = arith.addf %383, %382 : vector<8x64xf32>
    %385 = arith.mulf %346, %384 : vector<8x64xf32>
    %c1_181 = arith.constant 1 : index
    %c0_182 = arith.constant 0 : index
    %c0_183 = arith.constant 0 : index
    %386 = vector.load %arg14[%c1_181, %c0_182, %c0_183] : memref<2x64x32xf32, #tpu.memory_space<vmem>>, vector<1x64x32xf32>
    %387 = vector.shape_cast %386 : vector<1x64x32xf32> to vector<64x32xf32>
    %cst_184 = arith.constant dense<0.000000e+00> : vector<8x32xf32>
    %388 = tpu.matmul %385, %387, %cst_184 {dimension_numbers = #tpu.dot_dimension_numbers<[1], [0], [0], [1], [0, 0, 1, 1], [], []>} : vector<8x64xf32>, vector<64x32xf32>, vector<8x32xf32> -> vector<8x32xf32>
    %389 = arith.addf %313, %388 : vector<8x32xf32>
    %c1_185 = arith.constant 1 : index
    %c0_186 = arith.constant 0 : index
    %c0_187 = arith.constant 0 : index
    %390 = vector.load %arg15[%c1_185, %c0_186, %c0_187] : memref<2x1x32xf32, #tpu.memory_space<vmem>>, vector<1x1x32xf32>
    %391 = vector.shape_cast %390 : vector<1x1x32xf32> to vector<1x32xf32>
    %392 = vector.broadcast %391 : vector<1x32xf32> to vector<8x32xf32>
    %393 = arith.addf %389, %392 : vector<8x32xf32>
    %394 = vector.extract_strided_slice %393 {offsets = [0, 0], sizes = [1, 32], strides = [1, 1]} : vector<8x32xf32> to vector<1x32xf32>
    %c0_188 = arith.constant 0 : index
    %c0_189 = arith.constant 0 : index
    %395 = vector.load %arg16[%c0_188, %c0_189] : memref<1x32xf32, #tpu.memory_space<vmem>>, vector<1x32xf32>
    %c0_190 = arith.constant 0 : index
    %c0_191 = arith.constant 0 : index
    %396 = vector.load %arg17[%c0_190, %c0_191] : memref<1x32xf32, #tpu.memory_space<vmem>>, vector<1x32xf32>
    %cst_192 = arith.constant dense<0.000000e+00> : vector<1xf32>
    %397 = vector.multi_reduction <add>, %394, %cst_192 [1] : vector<1x32xf32> to vector<1xf32>
    %398 = vector.shape_cast %397 : vector<1xf32> to vector<1x1xf32>
    %cst_193 = arith.constant 3.200000e+01 : f32
    %399 = vector.broadcast %cst_193 : f32 to vector<1x1xf32>
    %400 = arith.divf %398, %399 : vector<1x1xf32>
    %401 = vector.broadcast %400 : vector<1x1xf32> to vector<1x32xf32>
    %402 = arith.subf %394, %401 : vector<1x32xf32>
    %403 = arith.mulf %402, %402 : vector<1x32xf32>
    %cst_194 = arith.constant dense<0.000000e+00> : vector<1xf32>
    %404 = vector.multi_reduction <add>, %403, %cst_194 [1] : vector<1x32xf32> to vector<1xf32>
    %405 = vector.shape_cast %404 : vector<1xf32> to vector<1x1xf32>
    %cst_195 = arith.constant 3.200000e+01 : f32
    %406 = vector.broadcast %cst_195 : f32 to vector<1x1xf32>
    %407 = arith.divf %405, %406 : vector<1x1xf32>
    %cst_196 = arith.constant 9.99999997E-7 : f32
    %408 = vector.broadcast %cst_196 : f32 to vector<1x1xf32>
    %409 = arith.addf %407, %408 : vector<1x1xf32>
    %410 = math.rsqrt %409 : vector<1x1xf32>
    %411 = vector.broadcast %410 : vector<1x1xf32> to vector<1x32xf32>
    %412 = arith.mulf %402, %411 : vector<1x32xf32>
    %413 = arith.mulf %412, %395 : vector<1x32xf32>
    %414 = arith.addf %413, %396 : vector<1x32xf32>
    %c0_197 = arith.constant 0 : index
    %c0_198 = arith.constant 0 : index
    %415 = vector.load %arg18[%c0_197, %c0_198] : memref<32x10xf32, #tpu.memory_space<vmem>>, vector<32x10xf32>
    %cst_199 = arith.constant dense<0.000000e+00> : vector<1x10xf32>
    %416 = tpu.matmul %414, %415, %cst_199 {dimension_numbers = #tpu.dot_dimension_numbers<[1], [0], [0], [1], [0, 0, 1, 1], [], []>} : vector<1x32xf32>, vector<32x10xf32>, vector<1x10xf32> -> vector<1x10xf32>
    %c0_200 = arith.constant 0 : index
    %c0_201 = arith.constant 0 : index
    %417 = vector.load %arg19[%c0_200, %c0_201] : memref<1x10xf32, #tpu.memory_space<vmem>>, vector<1x10xf32>
    %418 = arith.addf %416, %417 : vector<1x10xf32>
    %c0_202 = arith.constant 0 : index
    %c0_203 = arith.constant 0 : index
    %c0_204 = arith.constant 0 : index
    %419 = vector.load %arg20[%c0_202, %c0_203, %c0_204] : memref<1x1x10xf32, #tpu.memory_space<vmem>>, vector<1x1x10xf32>
    %420 = vector.shape_cast %419 : vector<1x1x10xf32> to vector<1x10xf32>
    %421 = vector.shape_cast %418 : vector<1x10xf32> to vector<1x1x10xf32>
    tpu.vector_store %arg20[%c0_202, %c0_203, %c0_204], %421 {strides = array<i32>} : memref<1x1x10xf32, #tpu.memory_space<vmem>>, vector<1x1x10xf32>,
    return
  }
  func.func @transform_0(%arg0: i32) -> (i32, i32, i32) {
    %c0_i32 = arith.constant 0 : i32
    %c0_i32_0 = arith.constant 0 : i32
    %c0_i32_1 = arith.constant 0 : i32
    return %arg0, %c0_i32, %c0_i32_0 : i32, i32, i32
  }
  func.func @transform_1(%arg0: i32) -> (i32, i32) {
    %c0_i32 = arith.constant 0 : i32
    %c0_i32_0 = arith.constant 0 : i32
    %c0_i32_1 = arith.constant 0 : i32
    return %c0_i32, %c0_i32_0 : i32, i32
  }
  func.func @transform_2(%arg0: i32) -> (i32, i32) {
    %c0_i32 = arith.constant 0 : i32
    %c0_i32_0 = arith.constant 0 : i32
    %c0_i32_1 = arith.constant 0 : i32
    return %c0_i32, %c0_i32_0 : i32, i32
  }
  func.func @transform_3(%arg0: i32) -> (i32, i32, i32) {
    %c0_i32 = arith.constant 0 : i32
    %c0_i32_0 = arith.constant 0 : i32
    %c0_i32_1 = arith.constant 0 : i32
    %c0_i32_2 = arith.constant 0 : i32
    return %c0_i32, %c0_i32_0, %c0_i32_1 : i32, i32, i32
  }
  func.func @transform_4(%arg0: i32) -> (i32, i32, i32) {
    %c0_i32 = arith.constant 0 : i32
    %c0_i32_0 = arith.constant 0 : i32
    %c0_i32_1 = arith.constant 0 : i32
    %c0_i32_2 = arith.constant 0 : i32
    return %c0_i32, %c0_i32_0, %c0_i32_1 : i32, i32, i32
  }
  func.func @transform_5(%arg0: i32) -> (i32, i32, i32) {
    %c0_i32 = arith.constant 0 : i32
    %c0_i32_0 = arith.constant 0 : i32
    %c0_i32_1 = arith.constant 0 : i32
    %c0_i32_2 = arith.constant 0 : i32
    return %c0_i32, %c0_i32_0, %c0_i32_1 : i32, i32, i32
  }
  func.func @transform_6(%arg0: i32) -> (i32, i32, i32) {
    %c0_i32 = arith.constant 0 : i32
    %c0_i32_0 = arith.constant 0 : i32
    %c0_i32_1 = arith.constant 0 : i32
    %c0_i32_2 = arith.constant 0 : i32
    return %c0_i32, %c0_i32_0, %c0_i32_1 : i32, i32, i32
  }
  func.func @transform_7(%arg0: i32) -> (i32, i32, i32) {
    %c0_i32 = arith.constant 0 : i32
    %c0_i32_0 = arith.constant 0 : i32
    %c0_i32_1 = arith.constant 0 : i32
    %c0_i32_2 = arith.constant 0 : i32
    return %c0_i32, %c0_i32_0, %c0_i32_1 : i32, i32, i32
  }
  func.func @transform_8(%arg0: i32) -> (i32, i32, i32) {
    %c0_i32 = arith.constant 0 : i32
    %c0_i32_0 = arith.constant 0 : i32
    %c0_i32_1 = arith.constant 0 : i32
    %c0_i32_2 = arith.constant 0 : i32
    return %c0_i32, %c0_i32_0, %c0_i32_1 : i32, i32, i32
  }
  func.func @transform_9(%arg0: i32) -> (i32, i32, i32) {
    %c0_i32 = arith.constant 0 : i32
    %c0_i32_0 = arith.constant 0 : i32
    %c0_i32_1 = arith.constant 0 : i32
    %c0_i32_2 = arith.constant 0 : i32
    return %c0_i32, %c0_i32_0, %c0_i32_1 : i32, i32, i32
  }
  func.func @transform_10(%arg0: i32) -> (i32, i32, i32) {
    %c0_i32 = arith.constant 0 : i32
    %c0_i32_0 = arith.constant 0 : i32
    %c0_i32_1 = arith.constant 0 : i32
    %c0_i32_2 = arith.constant 0 : i32
    return %c0_i32, %c0_i32_0, %c0_i32_1 : i32, i32, i32
  }
  func.func @transform_11(%arg0: i32) -> (i32, i32, i32) {
    %c0_i32 = arith.constant 0 : i32
    %c0_i32_0 = arith.constant 0 : i32
    %c0_i32_1 = arith.constant 0 : i32
    %c0_i32_2 = arith.constant 0 : i32
    return %c0_i32, %c0_i32_0, %c0_i32_1 : i32, i32, i32
  }
  func.func @transform_12(%arg0: i32) -> (i32, i32, i32) {
    %c0_i32 = arith.constant 0 : i32
    %c0_i32_0 = arith.constant 0 : i32
    %c0_i32_1 = arith.constant 0 : i32
    %c0_i32_2 = arith.constant 0 : i32
    return %c0_i32, %c0_i32_0, %c0_i32_1 : i32, i32, i32
  }
  func.func @transform_13(%arg0: i32) -> (i32, i32, i32) {
    %c0_i32 = arith.constant 0 : i32
    %c0_i32_0 = arith.constant 0 : i32
    %c0_i32_1 = arith.constant 0 : i32
    %c0_i32_2 = arith.constant 0 : i32
    return %c0_i32, %c0_i32_0, %c0_i32_1 : i32, i32, i32
  }
  func.func @transform_14(%arg0: i32) -> (i32, i32, i32) {
    %c0_i32 = arith.constant 0 : i32
    %c0_i32_0 = arith.constant 0 : i32
    %c0_i32_1 = arith.constant 0 : i32
    %c0_i32_2 = arith.constant 0 : i32
    return %c0_i32, %c0_i32_0, %c0_i32_1 : i32, i32, i32
  }
  func.func @transform_15(%arg0: i32) -> (i32, i32) {
    %c0_i32 = arith.constant 0 : i32
    %c0_i32_0 = arith.constant 0 : i32
    %c0_i32_1 = arith.constant 0 : i32
    return %c0_i32, %c0_i32_0 : i32, i32
  }
  func.func @transform_16(%arg0: i32) -> (i32, i32) {
    %c0_i32 = arith.constant 0 : i32
    %c0_i32_0 = arith.constant 0 : i32
    %c0_i32_1 = arith.constant 0 : i32
    return %c0_i32, %c0_i32_0 : i32, i32
  }
  func.func @transform_17(%arg0: i32) -> (i32, i32) {
    %c0_i32 = arith.constant 0 : i32
    %c0_i32_0 = arith.constant 0 : i32
    %c0_i32_1 = arith.constant 0 : i32
    return %c0_i32, %c0_i32_0 : i32, i32
  }
  func.func @transform_18(%arg0: i32) -> (i32, i32) {
    %c0_i32 = arith.constant 0 : i32
    %c0_i32_0 = arith.constant 0 : i32
    %c0_i32_1 = arith.constant 0 : i32
    return %c0_i32, %c0_i32_0 : i32, i32
  }
  func.func @transform_19(%arg0: i32) -> (i32, i32, i32) {
    %c0_i32 = arith.constant 0 : i32
    %c0_i32_0 = arith.constant 0 : i32
    %c0_i32_1 = arith.constant 0 : i32
    return %arg0, %c0_i32, %c0_i32_0 : i32, i32, i32
  }
}

</mosaic_0001>

<bundles_post_ra>
// kernel: vit_forward.1
= control target key start
LH: loop header
LB: loop body
LE: loop exit
PB: predicated region body
PF: predicated region fallthrough
CT: control target
= control target key end

     0   :  { %s3116_s0 = inlined_call_operand.vmem [shape: f32[2,8,768], index: 0, kind: input, shape index: {}]   ;;  %s3117_s1 = inlined_call_operand.vmem [shape: f32[768,32], index: 1, kind: input, shape index: {}]   ;;  %s3118_s2 = inlined_call_operand.vmem [shape: f32[8,32], index: 2, kind: input, shape index: {}]   ;;  %s3119_s3 = inlined_call_operand.vmem [shape: f32[2,1,32], index: 3, kind: input, shape index: {}]   ;;  %s3120_s4 = inlined_call_operand.vmem [shape: f32[2,1,32], index: 4, kind: input, shape index: {}]   ;;  %s3121_s5 = inlined_call_operand.vmem [shape: f32[2,32,96], index: 5, kind: input, shape index: {}]   ;;  %s3122_s6 = inlined_call_operand.vmem [shape: f32[2,1,96], index: 6, kind: input, shape index: {}]   ;;  %s3123_s7 = inlined_call_operand.vmem [shape: f32[2,32,32], index: 7, kind: input, shape index: {}]   ;;  %s3124_s8 = inlined_call_operand.vmem [shape: f32[2,1,32], index: 8, kind: input, shape index: {}]   ;;  %s3125_s9 = inlined_call_operand.vmem [shape: f32[2,1,32], index: 9, kind: input, shape index: {}]   ;;  %s3126_s10 = inlined_call_operand.vmem [shape: f32[2,1,32], index: 10, kind: input, shape index: {}]   ;;  %s3127_s11 = inlined_call_operand.vmem [shape: f32[2,32,64], index: 11, kind: input, shape index: {}]   ;;  %s3128_s12 = inlined_call_operand.vmem [shape: f32[2,1,64], index: 12, kind: input, shape index: {}]   ;;  %s3129_s13 = inlined_call_operand.vmem [shape: f32[2,64,32], index: 13, kind: input, shape index: {}]   ;;  %s3130_s14 = inlined_call_operand.vmem [shape: f32[2,1,32], index: 14, kind: input, shape index: {}]   ;;  %s3131_s15 = inlined_call_operand.vmem [shape: f32[1,32], index: 15, kind: input, shape index: {}]   ;;  %s3132_s16 = inlined_call_operand.vmem [shape: f32[1,32], index: 16, kind: input, shape index: {}]   ;;  %s3133_s17 = inlined_call_operand.vmem [shape: f32[32,10], index: 17, kind: input, shape index: {}]   ;;  %s3134_s18 = inlined_call_operand.vmem [shape: f32[1,10], index: 18, kind: input, shape index: {}]   ;;  %s3135_s19 = inlined_call_operand.hbm [shape: f32[2,1,10], index: 19, kind: output, shape index: {}]  }
   0x1   :  { %3156 = sst [smem:[#allocation13_spill]] %s3116_s0 }
   0x2   :  { %3157 = sst [smem:[#allocation14_spill]] %s3117_s1 }
   0x3   :  { %3158 = sst [smem:[#allocation15_spill]] %s3118_s2 }
   0x4   :  { %3159 = sst [smem:[#allocation16_spill]] %s3119_s3 }
   0x5   :  { %3160 = sst [smem:[#allocation17_spill]] %s3120_s4 }
   0x6   :  { %3161 = sst [smem:[#allocation18_spill]] %s3121_s5 }
   0x7   :  { %3162 = sst [smem:[#allocation19_spill]] %s3134_s18 }
   0x8   :  { %24 = vsyncpa [#allocation4], 0 }
   0x9   :  { %26 = vsyncpa [#allocation4 + $0x1], 0  ;;  %s2373_s0 = smov 0   ;;  %s2375_s30 = smov 0  }
   0xa   :  { %s2377_s20 = smov 0   ;;  %s2379_s21 = smov 0  }
   0xb LB: > { %3163 = sst [smem:[#allocation6_spill]] %s2242_s0  ;;  %s2394_s1 = sadd.s32 4294967295, %s2254_s21   ;;  %s2254_s21 = sphi %s2379_s21, %s3193_s21   ;;  %s2250_s20 = sphi %s2377_s20, %s3195_s20   ;;  %s2246_s30 = sphi %s2375_s30, %s3197_s30   ;;  %s2242_s0 = sphi %s2373_s0, %s3196_s0  }
   0xc   : > { %3164 = sst [smem:[#allocation7_spill]] %s2250_s20  ;;  %s1999_s22 = sadd.s32 4294967294, %s2254_s21  }
   0xd   : > { %3165 = sst [smem:[#allocation8_spill]] %s2254_s21  ;;  %s2398_s2 = sadd.s32 1, %s2254_s21  }
   0xe   : > { %3166 = sst [smem:[#allocation9_spill]] %s2398_s2  ;;  %s443_s23 = sadd.s32 1, %s2250_s20 }
   0xf   : > { %s440_s24 = ssub.s32 %s2254_s21, %s2398_s2  ;;  %p453_p0 = scmp.ne.s32.totalorder %s2250_s20, %s2246_s30 }
  0x10   : > { %p441_p1 = scmp.eq.s32.totalorder %s440_s24, 0  ;;  %p454_p2 = scmp.eq.s32.totalorder %s2394_s1, 1 }
  0x11   : > { %p459_p3 = scmp.ne.s32.totalorder %s2246_s30, %s2242_s0  ;;  %p460_p4 = scmp.eq.s32.totalorder %s1999_s22, 1 }
  0x12   : > { %s2409_s25 = scalar_select %p441_p1, %s2250_s20, %s443_s23  }
  0x13   : > { %p2411_p5 = por %p454_p2, %p453_p0  ;;  %p2415_p6 = por %p460_p4, %p459_p3 }
  0x14   : > { %3167 = sst [smem:[#allocation10_spill]] %s2409_s25  ;;  %p2002_p7 = scmp.ge.s32.totalorder %s2254_s21, 1 }
  0x15   : > { %s3168_s3 = scalar_select %p2411_p5, 1, 0 }
  0x16   : > { %s3170_s26 = scalar_select %p2415_p6, 1, 0 }
  0x17   : > { %3169 = sst [smem:[#allocation11_spill]] %s3168_s3  ;;  %p540_p8 = scmp.lt.s32.totalorder %s2254_s21, 3 }
  0x18   : > { %3171 = sst [smem:[#allocation12_spill]] %s3170_s26 }
  0x19   : > { %p541_p9 = pnand %p2002_p7, %p540_p8 }
  0x1a   : > { %s3172_s29 = sld [smem:[#allocation14_spill]] (!%p541_p9)  ;;  %p595_p10 = scmp.lt.s32.totalorder (!%p541_p9), %s2394_s1, 1 }
  0x1b   : > { %544 = sbr.rel (%p541_p9) target bundleno = 4828 (0x12dc), region = 96  ;;  %s3173_s3 = sld [smem:[#allocation13_spill]] (!%p541_p9) }
  0x1c   : > { %s3175_s5 = sld [smem:[#allocation18_spill]] (!%p541_p9)  ;;  %s2257_s28 = smov (!%p541_p9), 112  }
  0x1d   : > { %s3176_s26 = sld [smem:[#allocation16_spill]] (!%p541_p9)  ;;  %s3149_s21 = smov (!%p541_p9), 120  }
  0x1e   : > { %s3177_s4 = sld [smem:[#allocation17_spill]] (!%p541_p9)  ;;  %s2259_s24 = smov (!%p541_p9), 96  }
  0x1f   : > { %s2260_s22 = smov (!%p541_p9), 80   ;;  %s3153_s25 = smov (!%p541_p9), 104  }
  0x20   : > { %v621_v0 = vld [vmem:[%s3172_s29 + $0x78] sm:$0xff]  ;;  %v620_v1 = vld [vmem:[%s3172_s29 + $0x70] sm:$0xff]  ;;  %v619_v4 = vld [vmem:[%s3172_s29 + $0x68] sm:$0xff]  ;;  %s2572_s0 = scalar_select %p595_p10, %s2394_s1, 1  ;;  %vm829_vm0 = vcmask 261120   ;;  %vm901_vm5 = vcmask 64512  }
  0x21   : > { %v637_v2 = vld [vmem:[%s3172_s29 + $0xf8] sm:$0xff]  ;;  %703 = vmatpush.msra.mxu0 %v621_v0  ;;  %v636_v3 = vld [vmem:[%s3172_s29 + $0xf0] sm:$0xff]  ;;  %v635_v5 = vld [vmem:[%s3172_s29 + $0xe8] sm:$0xff]  ;;  %s3150_s20 = smov 72   ;;  %s3151_s2 = smov 64   ;;  %vm1033_vm7 = vcmask 130112  }
  0x22   : > { %723 = vmatpush.msra.mxu1 %v637_v2  ;;  %v618_v6 = vld [vmem:[%s3172_s29 + $0x60] sm:$0xff]  ;;  %v617_v8 = vld [vmem:[%s3172_s29 + $0x58] sm:$0xff]  ;;  %v616_v10 = vld [vmem:[%s3172_s29 + $0x50] sm:$0xff]  ;;  %s2067_s23 = smul.u32 48, %s2572_s0  ;;  %s2261_s0 = smov 88   ;;  %vm1104_vm8 = vcmask 195712  }
  0x23   : > { %704 = vmatpush.msra.mxu0 %v620_v1  ;;  %v634_v7 = vld [vmem:[%s3172_s29 + $0xe0] sm:$0xff]  ;;  %v633_v9 = vld [vmem:[%s3172_s29 + $0xd8] sm:$0xff]  ;;  %v632_v12 = vld [vmem:[%s3172_s29 + $0xd0] sm:$0xff]  ;;  %s3146_s27 = smov 40   ;;  %vm1175_vm9 = vcmask 261312  }
  0x24   : > { %724 = vmatpush.msra.mxu1 %v636_v3  ;;  %v653_v11 = vld [vmem:[%s3172_s29 + $0x178] sm:$0xff]  ;;  %v652_v13 = vld [vmem:[%s3172_s29 + $0x170] sm:$0xff]  ;;  %v651_v15 = vld [vmem:[%s3172_s29 + $0x168] sm:$0xff]  ;;  %s2638_s18 = scalar_lea.vmem %s3173_s3, %s2067_s23  ;;  %s3174_s3 = sld [smem:[#allocation15_spill]] }
  0x25   : > { %705 = vmatpush.msra.mxu0 %v619_v4  ;;  %743 = vmatpush.msra.mxu2 %v653_v11  ;;  %v669_v14 = vld [vmem:[%s3172_s29 + $0x1f8] sm:$0xff]  ;;  %v668_v16 = vld [vmem:[%s3172_s29 + $0x1f0] sm:$0xff]  ;;  %v615_v17 = vld [vmem:[%s3172_s29 + $0x48] sm:$0xff]  ;;  %s3152_s23 = smov 8  }
  0x26   : > { %725 = vmatpush.msra.mxu1 %v635_v5  ;;  %v631_v18 = vld [vmem:[%s3172_s29 + $0xc8] sm:$0xff]  ;;  %763 = vmatpush.msra.mxu3 %v669_v14  ;;  %v650_v19 = vld [vmem:[%s3172_s29 + $0x160] sm:$0xff]  ;;  %v649_v23 = vld [vmem:[%s3172_s29 + $0x158] sm:$0xff] }
  0x27   : > { %706 = vmatpush.msra.mxu0 %v618_v6  ;;  %744 = vmatpush.msra.mxu2 %v652_v13  ;;  %v667_v20 = vld [vmem:[%s3172_s29 + $0x1e8] sm:$0xff]  ;;  %v614_v21 = vld [vmem:[%s3172_s29 + $0x40] sm:$0xff]  ;;  %v613_v25 = vld [vmem:[%s3172_s29 + $0x38] sm:$0xff] }
  0x28   : > { %726 = vmatpush.msra.mxu1 %v634_v7  ;;  %v630_v22 = vld [vmem:[%s3172_s29 + $0xc0] sm:$0xff]  ;;  %764 = vmatpush.msra.mxu3 %v668_v16  ;;  %v629_v26 = vld [vmem:[%s3172_s29 + $0xb8] sm:$0xff]  ;;  %v648_v27 = vld [vmem:[%s3172_s29 + $0x150] sm:$0xff] }
  0x29   : > { %707 = vmatpush.msra.mxu0 %v617_v8  ;;  %745 = vmatpush.msra.mxu2 %v651_v15  ;;  %v666_v24 = vld [vmem:[%s3172_s29 + $0x1e0] sm:$0xff]  ;;  %v665_v28 = vld [vmem:[%s3172_s29 + $0x1d8] sm:$0xff]  ;;  %v612_v29 = vld [vmem:[%s3172_s29 + $0x30] sm:$0xff] }
  0x2a   : > { %727 = vmatpush.msra.mxu1 %v633_v9  ;;  %765 = vmatpush.msra.mxu3 %v667_v20  ;;  %v628_v30 = vld [vmem:[%s3172_s29 + $0xb0] sm:$0xff]  ;;  %v647_v31 = vld [vmem:[%s3172_s29 + $0x148] sm:$0xff]  ;;  %v646_v35 = vld [vmem:[%s3172_s29 + $0x140] sm:$0xff] }
  0x2b   : > { %708 = vmatpush.msra.mxu0 %v616_v10  ;;  %746 = vmatpush.msra.mxu2 %v650_v19  ;;  %v664_v32 = vld [vmem:[%s3172_s29 + $0x1d0] sm:$0xff]  ;;  %v611_v33 = vld [vmem:[%s3172_s29 + $0x28] sm:$0xff]  ;;  %v610_v37 = vld [vmem:[%s3172_s29 + $0x20] sm:$0xff] }
  0x2c   : > { %728 = vmatpush.msra.mxu1 %v632_v12  ;;  %766 = vmatpush.msra.mxu3 %v666_v24  ;;  %v627_v34 = vld [vmem:[%s3172_s29 + $0xa8] sm:$0xff]  ;;  %v626_v38 = vld [vmem:[%s3172_s29 + $0xa0] sm:$0xff]  ;;  %v645_v39 = vld [vmem:[%s3172_s29 + $0x138] sm:$0xff] }
  0x2d   : > { %709 = vmatpush.msra.mxu0 %v615_v17  ;;  %747 = vmatpush.msra.mxu2 %v649_v23  ;;  %v663_v36 = vld [vmem:[%s3172_s29 + $0x1c8] sm:$0xff]  ;;  %v662_v40 = vld [vmem:[%s3172_s29 + $0x1c0] sm:$0xff]  ;;  %v609_v41 = vld [vmem:[%s3172_s29 + $0x18] sm:$0xff] }
  0x2e   : > { %729 = vmatpush.msra.mxu1 %v631_v18  ;;  %767 = vmatpush.msra.mxu3 %v665_v28  ;;  %v625_v42 = vld [vmem:[%s3172_s29 + $0x98] sm:$0xff]  ;;  %v644_v43 = vld [vmem:[%s3172_s29 + $0x130] sm:$0xff]  ;;  %v643_v47 = vld [vmem:[%s3172_s29 + $0x128] sm:$0xff] }
  0x2f   : > { %710 = vmatpush.msra.mxu0 %v614_v21  ;;  %748 = vmatpush.msra.mxu2 %v648_v27  ;;  %v661_v44 = vld [vmem:[%s3172_s29 + $0x1b8] sm:$0xff]  ;;  %v608_v45 = vld [vmem:[%s3172_s29 + $0x10] sm:$0xff]  ;;  %v607_v49 = vld [vmem:[%s3172_s29 + $0x8] sm:$0xff] }
  0x30   : > { %730 = vmatpush.msra.mxu1 %v630_v22  ;;  %768 = vmatpush.msra.mxu3 %v664_v32  ;;  %v624_v46 = vld [vmem:[%s3172_s29 + $0x90] sm:$0xff]  ;;  %v623_v50 = vld [vmem:[%s3172_s29 + $0x88] sm:$0xff]  ;;  %v642_v51 = vld [vmem:[%s3172_s29 + $0x120] sm:$0xff] }
  0x31   : > { %711 = vmatpush.msra.mxu0 %v613_v25  ;;  %749 = vmatpush.msra.mxu2 %v647_v31  ;;  %v660_v48 = vld [vmem:[%s3172_s29 + $0x1b0] sm:$0xff]  ;;  %v659_v52 = vld [vmem:[%s3172_s29 + $0x1a8] sm:$0xff]  ;;  %v606_v53 = vld [vmem:[%s3172_s29] sm:$0xff] }
  0x32   : > { %731 = vmatpush.msra.mxu1 %v629_v26  ;;  %769 = vmatpush.msra.mxu3 %v663_v36  ;;  %v622_v54 = vld [vmem:[%s3172_s29 + $0x80] sm:$0xff]  ;;  %v685_v55 = vld [vmem:[%s3172_s29 + $0x278] sm:$0xff]  ;;  %v684_v59 = vld [vmem:[%s3172_s29 + $0x270] sm:$0xff] }
  0x33   : > { %712 = vmatpush.msra.mxu0 %v612_v29  ;;  %750 = vmatpush.msra.mxu2 %v646_v35  ;;  %v701_v56 = vld [vmem:[%s3172_s29 + $0x2f8] sm:$0xff]  ;;  %v658_v58 = vld [vmem:[%s3172_s29 + $0x1a0] sm:$0xff]  ;;  %v683_v60 = vld [vmem:[%s3172_s29 + $0x268] sm:$0xff] }
  0x34   : > { %732 = vmatpush.msra.mxu1 %v628_v30  ;;  %770 = vmatpush.msra.mxu3 %v662_v40  ;;  %v641_v57 = vld [vmem:[%s3172_s29 + $0x118] sm:$0xff]  ;;  %v700_v61 = vld [vmem:[%s3172_s29 + $0x2f0] sm:$0xff]  ;;  %v699_v62 = vld [vmem:[%s3172_s29 + $0x2e8] sm:$0xff] }
  0x35   : > { %713 = vmatpush.msra.mxu0 %v611_v33  ;;  %751 = vmatpush.msra.mxu2 %v645_v39  ;;  %v640_v63 = vld [vmem:[%s3172_s29 + $0x110] sm:$0xff]  ;;  %v657_v0 = vld [vmem:[%s3172_s29 + $0x198] sm:$0xff]  ;;  %v682_v1 = vld [vmem:[%s3172_s29 + $0x260] sm:$0xff] }
  0x36   : > { %733 = vmatpush.msra.mxu1 %v627_v34  ;;  %771 = vmatpush.msra.mxu3 %v661_v44  ;;  %v698_v2 = vld [vmem:[%s3172_s29 + $0x2e0] sm:$0xff]  ;;  %v639_v3 = vld [vmem:[%s3172_s29 + $0x108] sm:$0xff]  ;;  %v656_v4 = vld [vmem:[%s3172_s29 + $0x190] sm:$0xff] }
  0x37   : > { %714 = vmatpush.msra.mxu0 %v610_v37  ;;  %752 = vmatpush.msra.mxu2 %v644_v43  ;;  %v638_v5 = vld [vmem:[%s3172_s29 + $0x100] sm:$0xff]  ;;  %v655_v6 = vld [vmem:[%s3172_s29 + $0x188] sm:$0xff]  ;;  %v681_v7 = vld [vmem:[%s3172_s29 + $0x258] sm:$0xff] }
  0x38   : > { %734 = vmatpush.msra.mxu1 %v626_v38  ;;  %772 = vmatpush.msra.mxu3 %v660_v48  ;;  %v697_v8 = vld [vmem:[%s3172_s29 + $0x2d8] sm:$0xff]  ;;  %v602_v9 = vld [vmem:[%s2638_s18 + $0x10] sm:$0xff]  ;;  %v654_v10 = vld [vmem:[%s3172_s29 + $0x180] sm:$0xff] }
  0x39   : > { %715 = vmatpush.msra.mxu0 %v609_v41  ;;  %753 = vmatpush.msra.mxu2 %v643_v47  ;;  %v680_v11 = vld [vmem:[%s3172_s29 + $0x250] sm:$0xff]  ;;  %v600_v13 = vld [vmem:[%s2638_s18] sm:$0xff]  ;;  %v603_v14 = vld [vmem:[%s2638_s18 + $0x18] sm:$0xff] }
  0x3a   : > { %735 = vmatpush.msra.mxu1 %v625_v42  ;;  %773 = vmatpush.msra.mxu3 %v659_v52  ;;  %v696_v12 = vld [vmem:[%s3172_s29 + $0x2d0] sm:$0xff]  ;;  %v679_v15 = vld [vmem:[%s3172_s29 + $0x248] sm:$0xff]  ;;  %v678_v18 = vld [vmem:[%s3172_s29 + $0x240] sm:$0xff]  ;;  %v2256_v52 = vmov 32.0  }
  0x3b   : > { %716 = vmatpush.msra.mxu0 %v608_v45  ;;  %754 = vmatpush.msra.mxu2 %v642_v51  ;;  %v695_v16 = vld [vmem:[%s3172_s29 + $0x2c8] sm:$0xff]  ;;  %v694_v19 = vld [vmem:[%s3172_s29 + $0x2c0] sm:$0xff]  ;;  %v677_v20 = vld [vmem:[%s3172_s29 + $0x238] sm:$0xff]  ;;  %2140 = vrcp.f32 %v2256_v52 }
  0x3c   : > { %736 = vmatpush.msra.mxu1 %v624_v46  ;;  %774 = vmatpush.msra.mxu3 %v658_v58  ;;  %v601_v17 = vld [vmem:[%s2638_s18 + $0x8] sm:$0xff]  ;;  %v693_v21 = vld [vmem:[%s3172_s29 + $0x2b8] sm:$0xff]  ;;  %v676_v22 = vld [vmem:[%s3172_s29 + $0x230] sm:$0xff] }
  0x3d   : > { %717 = vmatpush.msra.mxu0 %v607_v49  ;;  %755 = vmatpush.msra.mxu2 %v641_v57  ;;  %v692_v23 = vld [vmem:[%s3172_s29 + $0x2b0] sm:$0xff]  ;;  %v675_v24 = vld [vmem:[%s3172_s29 + $0x228] sm:$0xff]  ;;  %v674_v26 = vld [vmem:[%s3172_s29 + $0x220] sm:$0xff] }
  0x3e   : > { %737 = vmatpush.msra.mxu1 %v623_v50  ;;  %775 = vmatpush.msra.mxu3 %v657_v0  ;;  %v691_v25 = vld [vmem:[%s3172_s29 + $0x2a8] sm:$0xff]  ;;  %v690_v27 = vld [vmem:[%s3172_s29 + $0x2a0] sm:$0xff]  ;;  %v673_v28 = vld [vmem:[%s3172_s29 + $0x218] sm:$0xff] }
  0x3f   : > { %718 = vmatpush.msra.mxu0 %v606_v53  ;;  %756 = vmatpush.msra.mxu2 %v640_v63  ;;  %v689_v29 = vld [vmem:[%s3172_s29 + $0x298] sm:$0xff]  ;;  %v672_v30 = vld [vmem:[%s3172_s29 + $0x210] sm:$0xff]  ;;  %v671_v32 = vld [vmem:[%s3172_s29 + $0x208] sm:$0xff] }
  0x40   : > { %738 = vmatpush.msra.mxu1 %v622_v54  ;;  %776 = vmatpush.msra.mxu3 %v656_v4  ;;  %v688_v31 = vld [vmem:[%s3172_s29 + $0x290] sm:$0xff]  ;;  %v687_v33 = vld [vmem:[%s3172_s29 + $0x288] sm:$0xff]  ;;  %v670_v34 = vld [vmem:[%s3172_s29 + $0x200] sm:$0xff] }
  0x41   : > { %783 = vmatpush.msrb.mxu0 %v685_v55  ;;  %757 = vmatpush.msra.mxu2 %v639_v3  ;;  %v686_v35 = vld [vmem:[%s3172_s29 + $0x280] sm:$0xff]  ;;  %v605_v37 = vld [vmem:[%s2638_s18 + $0x28] sm:$0xff]  ;;  %v2141_v53 = vpop.eup %2140  ;;  %v870_v0 = vld [vmem:[%s3175_s5 + $0x18] sm:$0xff] }
  0x42   : > { %803 = vmatpush.msrb.mxu1 %v701_v56  ;;  %777 = vmatpush.msra.mxu3 %v655_v6  ;;  %v604_v36 = vld [vmem:[%s2638_s18 + $0x20] sm:$0xff]  ;;  %v834_v54 = vmul.f32 32.0, %v2141_v53  ;;  %vm838_vm1 = vweird.f32 %v2141_v53  ;;  %s3147_s18 = smov 48  }
  0x43   : > { %784 = vmatpush.msrb.mxu0 %v684_v59  ;;  %758 = vmatpush.msra.mxu2 %v638_v5  ;;  %v702_v38 = vld [vmem:[%s3174_s3] sm:$0xff]  ;;  %s3148_s3 = smov 56  }
  0x44   : > { %804 = vmatpush.msrb.mxu1 %v700_v61  ;;  %759 = vmatmul.f32.vlgmr.msra.gmra.mxu2 %v602_v9  ;;  %v835_v55 = vsub.f32 1.0, %v834_v54  ;;  %v867_v3 = vld [vmem:[%s3175_s5] sm:$0xff] }
  0x45   : > { %785 = vmatpush.msrb.mxu0 %v683_v60  ;;  %778 = vmatpush.msra.mxu3 %v654_v10 }
  0x46   : > { %805 = vmatpush.msrb.mxu1 %v699_v62  ;;  %719 = vmatmul.f32.vlgmr.msra.gmra.mxu0 %v600_v13  ;;  %v836_v56 = vmul.f32 %v2141_v53, %v835_v55  ;;  %v2124_v13 = vld [vmem:[%s3176_s26] ss:$0 sm:$0xff] }
  0x47   : > { %786 = vmatpush.msrb.mxu0 %v682_v1  ;;  %779 = vmatmul.f32.vlgmr.msra.gmra.mxu3 %v603_v14  ;;  %v869_v1 = vld [vmem:[%s3175_s5 + $0x10] sm:$0xff] }
  0x48   : > { %806 = vmatpush.msrb.mxu1 %v698_v2  ;;  %v837_v57 = vadd.f32 %v2141_v53, %v836_v56  ;;  %890 = vmatpush.msrb.mxu2 %v870_v0  ;;  %v868_v2 = vld [vmem:[%s3175_s5 + $0x8] sm:$0xff] }
  0x49   : > { %787 = vmatpush.msrb.mxu0 %v681_v7  ;;  %739 = vmatmul.f32.vlgmr.msra.gmra.mxu1 %v601_v17 }
  0x4a   : > { %807 = vmatpush.msrb.mxu1 %v697_v8  ;;  %v2734_v58 = vsel %vm838_vm1, %v2141_v53, %v837_v57  ;;  %891 = vmatpush.msrb.mxu2 %v869_v1 }
  0x4b   : > { %788 = vmatpush.msrb.mxu0 %v680_v11 }
  0x4c   : > { %808 = vmatpush.msrb.mxu1 %v696_v12  ;;  %892 = vmatpush.msrb.mxu2 %v868_v2 }
  0x4d   : > { %789 = vmatpush.msrb.mxu0 %v679_v15 }
  0x4e   : > { %809 = vmatpush.msrb.mxu1 %v695_v16  ;;  %893 = vmatpush.msrb.mxu2 %v867_v3  ;;  %v2125_v16 = vld [vmem:[%s3177_s4] ss:$0 sm:$0xff] }
  0x4f   : > { %790 = vmatpush.msrb.mxu0 %v678_v18 }
  0x50   : > { %810 = vmatpush.msrb.mxu1 %v694_v19  ;;  %v2126_v19 = vld [vmem:[%s3122_s6] ss:$0 sm:$0xff] }
  0x51   : > { %791 = vmatpush.msrb.mxu0 %v677_v20 }
  0x52   : > { %811 = vmatpush.msrb.mxu1 %v693_v21 }
  0x53   : > { %792 = vmatpush.msrb.mxu0 %v676_v22 }
  0x54   : > { %812 = vmatpush.msrb.mxu1 %v692_v23 }
  0x55   : > { %793 = vmatpush.msrb.mxu0 %v675_v24 }
  0x56   : > { %813 = vmatpush.msrb.mxu1 %v691_v25 }
  0x57   : > { %794 = vmatpush.msrb.mxu0 %v674_v26 }
  0x58   : > { %814 = vmatpush.msrb.mxu1 %v690_v27 }
  0x59   : > { %795 = vmatpush.msrb.mxu0 %v673_v28 }
  0x5a   : > { %815 = vmatpush.msrb.mxu1 %v689_v29  ;;  %v823_v29 = vlaneseq }
  0x5b   : > { %796 = vmatpush.msrb.mxu0 %v672_v30 }
  0x5c   : > { %816 = vmatpush.msrb.mxu1 %v688_v31  ;;  %v824_v30 = vand.u32 127, %v823_v29  ;;  %v2264_v31 = vmov -1e+09  }
  0x5d   : > { %797 = vmatpush.msrb.mxu0 %v671_v32 }
  0x5e   : > { %817 = vmatpush.msrb.mxu1 %v687_v33  ;;  %vm825_vm6 = vcmp.lt.s32.totalorder %v824_v30, 5 }
  0x5f   : > { %798 = vmatpush.msrb.mxu0 %v670_v34  ;;  %v2787_v32 = vsel %vm825_vm6, 0.0, %v2264_v31  ;;  %v2127_v31 = vld [vmem:[%s3124_s8] ss:$0 sm:$0xff] }
  0x60   : > { %818 = vmatpush.msrb.mxu1 %v686_v35  ;;  %799 = vmatmul.f32.vlgmr.msrb.gmra.mxu0 %v604_v36 }
  0x61   : > { %819 = vmatmul.f32.vlgmr.msrb.gmra.mxu1 %v605_v37 }
  0xc3   : > { %v720_v39 = vpop.f32.mrf.mxu0 }
  0xc4   : > { %v721_v40 = vadd.f32 %v720_v39, %v702_v38 }
  0xc6   : > { %v740_v41 = vpop.f32.mrf.mxu1 }
  0xc7   : > { %v741_v42 = vadd.f32 %v740_v41, %v721_v40  ;;  %v760_v43 = vpop.f32.mrf.mxu2 }
  0xc9   : > { %v761_v44 = vadd.f32 %v760_v43, %v741_v42 }
  0xca   : > { %v780_v45 = vpop.f32.mrf.mxu3 }
  0xcb   : > { %v781_v46 = vadd.f32 %v780_v45, %v761_v44 }
  0xdd   : > { %v800_v47 = vpop.f32.mrf.mxu0 }
  0xde   : > { %v820_v48 = vpop.f32.mrf.mxu1  ;;  %v801_v49 = vadd.f32 %v800_v47, %v781_v46 }
  0xe0   : > { %v2730_v50 = vadd.f32 %v820_v48, %v801_v49 }
  0xe2   : > { %v830_v51 = vsel %vm829_vm0, %v2730_v50, 0.0 }
  0xe3   : > { %831 = vadd.xlane.f32.xlu0 %v830_v51 }
 0x156   : > { %v832_v59 = vpop.xlane.xlu0 %831 }
 0x157   : > { %v840_v60 = vmul.f32 %v2734_v58, %v832_v59 }
 0x159   : > { %v841_v61 = vsub.f32 %v2730_v50, %v840_v60 }
 0x15b   : > { %v842_v62 = vmul.f32 %v841_v61, %v841_v61 }
 0x15d   : > { %v843_v63 = vsel %vm829_vm0, %v842_v62, 0.0 }
 0x15e   : > { %844 = vadd.xlane.f32.xlu0 %v843_v63 }
 0x1d1   : > { %v845_v4 = vpop.xlane.xlu0 %844 }
 0x1d2   : > { %v846_v5 = vmul.f32 %v845_v4, %v2734_v58 }
 0x1d4   : > { %v847_v6 = vadd.f32 1e-06, %v846_v5 }
 0x1d6   : > { %2142 = vrsqrt.f32 %v847_v6  ;;  %vm854_vm3 = vweird.f32 %v847_v6 }
 0x1dc   : > { %v2143_v7 = vpop.eup %2142 }
 0x1dd   : > { %v849_v8 = vmul.f32 %v2143_v7, %v847_v6  ;;  %vm855_vm2 = vweird.f32 %v2143_v7 }
 0x1de   : > { %vm856_vm4 = vmor %vm854_vm3, %vm855_vm2  ;;  %vm1321_vm3 = vcmask 523264  }
 0x1df   : > { %v850_v9 = vmul.f32 %v2143_v7, %v849_v8 }
 0x1e1   : > { %v851_v10 = vmul.f32 0.5, %v850_v9 }
 0x1e3   : > { %v852_v11 = vsub.f32 1.5, %v851_v10 }
 0x1e5   : > { %v853_v12 = vmul.f32 %v2143_v7, %v852_v11 }
 0x1e7   : > { %v857_v14 = vsel %vm856_vm4, %v2143_v7, %v853_v12 }
 0x1e8   : > { %v858_v15 = vmul.f32 %v857_v14, %v841_v61 }
 0x1ea   : > { %v862_v17 = vmul.f32 %v2124_v13, %v858_v15 }
 0x1ec   : > { %v866_v18 = vadd.f32 %v2125_v16, %v862_v17 }
 0x1ee   : > { %2004 = vmatmul.msk.f32.vlgmr.msrb.gmra.mxu2 %vm829_vm0, %v866_v18 }
 0x271   : > { %v895_v20 = vpop.f32.mrf.mxu2 }
 0x272   : > { %v2762_v21 = vadd.f32 %v2126_v19, %v895_v20 }
 0x274   : > { %1035 = vrot.lane.b32.xlu0 %v2762_v21, %s2257_s28  ;;  %964 = vrot.lane.b32.xlu2 %v2762_v21, %s3149_s21  ;;  %s3178_s21 = smov 104  }
 0x275   : > { %899 = vrot.lane.b32.xlu1 %v2762_v21, %s2259_s24 }
 0x27c   : > { %1037 = vrot.lane.b32.xlu2 %v2762_v21, %s2260_s22 }
 0x27d   : > { %966 = vrot.lane.b32.xlu1 %v2762_v21, %s2261_s0 }
 0x284   : > { %1106 = vrot.lane.b32.xlu2 %v2762_v21, %s3153_s25  ;;  %s3183_s25 = smov 48  }
 0x285   : > { %1108 = vrot.lane.b32.xlu1 %v2762_v21, %s3150_s20  ;;  %s3184_s20 = smov 40  }
 0x2ce   : > { %v965_v22 = vpop.permute.xlu2 %964 }
 0x2d6   : > { %v1038_v25 = vpop.permute.xlu2 %1037 }
 0x2de   : > { %v1107_v28 = vpop.permute.xlu2 %1106 }
 0x2e6   : > { %v1036_v27 = vpop.permute.xlu0 %1035 }
 0x2e7   : > { %v900_v23 = vpop.permute.xlu1 %899 }
 0x2e8   : > { %2005 = vmatpush.xpose.msk.msrb.mxu3 %vm901_vm5, %v900_v23 }
 0x2eb   : > { %2006 = vmatmul.msk.f32.vlgmr.msrb.gmra.mxu3 %vm901_vm5, %v2762_v21 }
 0x2ef   : > { %v967_v24 = vpop.permute.xlu1 %966 }
 0x2f0   : > { %2008 = vmatpush.xpose.msk.msra.mxu3 %vm901_vm5, %v967_v24  ;;  %v1181_v24 = vld [vmem:[%s3123_s7 + $0x18] sm:$0xff] }
 0x2f1   : > { %1201 = vmatpush.msra.mxu1 %v1181_v24 }
 0x2f3   : > { %2009 = vmatmul.msk.f32.vlgmr.msra.gmra.mxu3 %vm901_vm5, %v965_v22 }
 0x2f4   : > { %2011 = vmatpush.xpose.msk.msrb.mxu3 %vm901_vm5, %v1038_v25  ;;  %v1180_v25 = vld [vmem:[%s3123_s7 + $0x10] sm:$0xff] }
 0x2f5   : > { %1202 = vmatpush.msra.mxu1 %v1180_v25 }
 0x2f7   : > { %v1109_v26 = vpop.permute.xlu1 %1108 }
 0x2f8   : > { %2014 = vmatpush.xpose.msk.msra.mxu3 %vm901_vm5, %v1109_v26  ;;  %v1179_v26 = vld [vmem:[%s3123_s7 + $0x8] sm:$0xff] }
 0x2f9   : > { %1203 = vmatpush.msra.mxu1 %v1179_v26 }
 0x2fb   : > { %2012 = vmatmul.msk.f32.vlgmr.msrb.gmra.mxu3 %vm901_vm5, %v1036_v27  ;;  %v1178_v27 = vld [vmem:[%s3123_s7] sm:$0xff] }
 0x2fc   : > { %1204 = vmatpush.msra.mxu1 %v1178_v27 }
 0x303   : > { %2015 = vmatmul.msk.f32.vlgmr.msra.gmra.mxu3 %vm901_vm5, %v1107_v28 }
 0x36e   : > { %v923_v33 = vpop.f32.mrf.mxu3 }
 0x36f   : > { %v924_v34 = vadd.f32 %v923_v33, %v2787_v32 }
 0x371   : > { %v926_v35 = vsel %vm901_vm5, %v924_v34, -inf }
 0x372   : > { %927 = vmax.xlane.f32.xlu1 %v926_v35 }
 0x376   : > { %v989_v36 = vpop.f32.mrf.mxu3 }
 0x377   : > { %v990_v37 = vadd.f32 %v989_v36, %v2787_v32 }
 0x379   : > { %v992_v38 = vsel %vm901_vm5, %v990_v37, -inf }
 0x37a   : > { %993 = vmax.xlane.f32.xlu2 %v992_v38 }
 0x37e   : > { %v1060_v39 = vpop.f32.mrf.mxu3 }
 0x37f   : > { %v1061_v40 = vadd.f32 %v1060_v39, %v2787_v32 }
 0x381   : > { %v1063_v41 = vsel %vm901_vm5, %v1061_v40, -inf }
 0x382   : > { %1064 = vmax.xlane.f32.xlu0 %v1063_v41 }
 0x386   : > { %v1131_v42 = vpop.f32.mrf.mxu3 }
 0x387   : > { %v1132_v43 = vadd.f32 %v1131_v42, %v2787_v32  ;;  %v1245_v42 = vld [vmem:[%s3127_s11 + $0x18] sm:$0xff] }
 0x389   : > { %v1134_v44 = vsel %vm901_vm5, %v1132_v43, -inf }
 0x38a   : > { %1135 = vmax.xlane.f32.xlu2 %v1134_v44  ;;  %v1242_v44 = vld [vmem:[%s3127_s11] sm:$0xff] }
 0x38b   : > { %937 = vrot.lane.b32.xlu1 %v2762_v21, %s3151_s2  ;;  %s3185_s2 = smov 16  }
 0x3e5   : > { %v928_v45 = vpop.xlane.xlu1 %927 }
 0x3e6   : > { %v929_v46 = vsub.f32 %v924_v34, %v928_v45 }
 0x3e8   : > { %v930_v47 = vmul.f32 1.442695, %v929_v46 }
 0x3ea   : > { %2144 = vpow2.f32 %v930_v47 }
 0x3ed   : > { %v994_v48 = vpop.xlane.xlu2 %993 }
 0x3ee   : > { %v995_v49 = vsub.f32 %v990_v37, %v994_v48 }
 0x3f0   : > { %v2145_v51 = vpop.eup %2144  ;;  %v996_v52 = vmul.f32 1.442695, %v995_v49 }
 0x3f1   : > { %v932_v53 = vsel %vm901_vm5, %v2145_v51, 0.0 }
 0x3f2   : > { %2146 = vpow2.f32 %v996_v52  ;;  %933 = vadd.xlane.f32.xlu1 %v932_v53 }
 0x3f5   : > { %v1065_v54 = vpop.xlane.xlu0 %1064 }
 0x3f6   : > { %v1066_v55 = vsub.f32 %v1061_v40, %v1065_v54 }
 0x3f8   : > { %v2147_v56 = vpop.eup %2146  ;;  %v1067_v57 = vmul.f32 1.442695, %v1066_v55  ;;  %v2128_v55 = vld [vmem:[%s3125_s9] ss:$0 sm:$0xff] }
 0x3f9   : > { %v998_v59 = vsel %vm901_vm5, %v2147_v56, 0.0 }
 0x3fa   : > { %2148 = vpow2.f32 %v1067_v57  ;;  %999 = vadd.xlane.f32.xlu2 %v998_v59  ;;  %v2129_v59 = vld [vmem:[%s3126_s10] ss:$0 sm:$0xff] }
 0x3fd   : > { %v1136_v60 = vpop.xlane.xlu2 %1135  ;;  %v938_v61 = vpop.permute.xlu1 %937 }
 0x3fe   : > { %v1137_v62 = vsub.f32 %v1132_v43, %v1136_v60  ;;  %958 = vmatpush.msra.mxu2 %v938_v61  ;;  %v1243_v43 = vld [vmem:[%s3127_s11 + $0x8] sm:$0xff] }
 0x400   : > { %v2149_v63 = vpop.eup %2148  ;;  %v1138_v0 = vmul.f32 1.442695, %v1137_v62  ;;  %v2130_v62 = vld [vmem:[%s3128_s12] ss:$0 sm:$0xff] }
 0x401   : > { %v1069_v1 = vsel %vm901_vm5, %v2149_v63, 0.0 }
 0x402   : > { %2150 = vpow2.f32 %v1138_v0  ;;  %1070 = vadd.xlane.f32.xlu0 %v1069_v1 }
 0x408   : > { %v2151_v2 = vpop.eup %2150 }
 0x409   : > { %v1140_v3 = vsel %vm901_vm5, %v2151_v2, 0.0 }
 0x40a   : > { %1141 = vadd.xlane.f32.xlu0 %v1140_v3 }
 0x40b   : > { %1145 = vrot.lane.b32.xlu1 %v2762_v21, %s3146_s27  ;;  %s3154_s27 = smov 16  }
 0x412   : > { %1003 = vrot.lane.b32.xlu2 %v2762_v21, %s3148_s3  ;;  %s3187_s3 = smov 24  }
 0x41e   : > { %1074 = vrot.lane.b32.xlu0 %v2762_v21, %s3147_s18  ;;  %s3155_s18 = smov 24  }
 0x465   : > { %v934_v4 = vpop.xlane.xlu1 %933 }
 0x466   : > { %2152 = vrcp.f32 %v934_v4 }
 0x46c   : > { %v2153_v5 = vpop.eup %2152 }
 0x46d   : > { %v936_v6 = vmul.f32 %v2153_v5, %v2145_v51  ;;  %v1000_v7 = vpop.xlane.xlu2 %999  ;;  %v1320_v5 = vld [vmem:[%s3129_s13 + $0x38] sm:$0xff] }
 0x46e   : > { %2154 = vrcp.f32 %v1000_v7  ;;  %1333 = vmatpush.msrb.mxu3 %v1320_v5  ;;  %v1318_v7 = vld [vmem:[%s3129_s13 + $0x28] sm:$0xff]  ;;  %v2132_v5 = vld [vmem:[%s3176_s26 + $0x1] ss:$0 sm:$0xff] }
 0x46f   : > { %2007 = vmatmul.msk.f32.vlgmr.msra.gmra.mxu2 %vm901_vm5, %v936_v6  ;;  %v1319_v6 = vld [vmem:[%s3129_s13 + $0x30] sm:$0xff] }
 0x470   : > { %1334 = vmatpush.msrb.mxu3 %v1319_v6 }
 0x472   : > { %1335 = vmatpush.msrb.mxu3 %v1318_v7 }
 0x474   : > { %v2155_v8 = vpop.eup %2154 }
 0x475   : > { %v1002_v9 = vmul.f32 %v2155_v8, %v2147_v56  ;;  %v1004_v10 = vpop.permute.xlu2 %1003  ;;  %v1071_v11 = vpop.xlane.xlu0 %1070  ;;  %v1317_v8 = vld [vmem:[%s3129_s13 + $0x20] sm:$0xff] }
 0x476   : > { %1024 = vmatpush.msrb.mxu2 %v1004_v10  ;;  %2156 = vrcp.f32 %v1071_v11  ;;  %1336 = vmatpush.msrb.mxu3 %v1317_v8  ;;  %v1316_v10 = vld [vmem:[%s3129_s13 + $0x18] sm:$0xff]  ;;  %v2133_v8 = vld [vmem:[%s3177_s4 + $0x1] ss:$0 sm:$0xff] }
 0x477   : > { %2010 = vmatmul.msk.f32.vlgmr.msrb.gmra.mxu2 %vm901_vm5, %v1002_v9 }
 0x478   : > { %1337 = vmatpush.msrb.mxu3 %v1316_v10 }
 0x47c   : > { %v2157_v13 = vpop.eup %2156 }
 0x47d   : > { %v1142_v12 = vpop.xlane.xlu0 %1141  ;;  %v1073_v14 = vmul.f32 %v2157_v13, %v2149_v63  ;;  %v1146_v16 = vpop.permute.xlu1 %1145 }
 0x47e   : > { %2158 = vrcp.f32 %v1142_v12  ;;  %v1315_v12 = vld [vmem:[%s3129_s13 + $0x10] sm:$0xff] }
 0x47f   : > { %1338 = vmatpush.msrb.mxu3 %v1315_v12 }
 0x484   : > { %v2159_v17 = vpop.eup %2158 }
 0x485   : > { %v1144_v18 = vmul.f32 %v2159_v17, %v2151_v2 }
 0x490   : > { %v1075_v15 = vpop.permute.xlu0 %1074 }
 0x491   : > { %1095 = vmatpush.msra.mxu2 %v1075_v15  ;;  %v1314_v15 = vld [vmem:[%s3129_s13 + $0x8] sm:$0xff] }
 0x492   : > { %2013 = vmatmul.msk.f32.vlgmr.msra.gmra.mxu2 %vm901_vm5, %v1073_v14  ;;  %1339 = vmatpush.msrb.mxu3 %v1314_v15 }
 0x493   : > { %1166 = vmatpush.msrb.mxu2 %v1146_v16 }
 0x495   : > { %1265 = vmatpush.msra.mxu2 %v1245_v42 }
 0x49a   : > { %2016 = vmatmul.msk.f32.vlgmr.msrb.gmra.mxu2 %vm901_vm5, %v1144_v18  ;;  %v1313_v18 = vld [vmem:[%s3129_s13] sm:$0xff] }
 0x49b   : > { %1340 = vmatpush.msrb.mxu3 %v1313_v18 }
 0x4f2   : > { %v960_v19 = vpop.f32.mrf.mxu2 }
 0x4f3   : > { %963 = vst.msk [vmem:[#allocation2] sm:$0xff] %vm901_vm5, %v960_v19 }
 0x4fa   : > { %v1026_v20 = vpop.f32.mrf.mxu2 }
 0x4fb   : > { %1030 = vrot.lane.b32.xlu2 %v1026_v20, %s3152_s23 }
 0x515   : > { %v1097_v21 = vpop.f32.mrf.mxu2 }
 0x516   : > { %1101 = vrot.lane.b32.xlu1 %v1097_v21, %s3154_s27  ;;  %s3186_s27 = smov 8  }
 0x51d   : > { %v1168_v22 = vpop.f32.mrf.mxu2 }
 0x51e   : > { %1172 = vrot.lane.b32.xlu2 %v1168_v22, %s3155_s18  ;;  %s3188_s18 = sld [smem:[#allocation19_spill]] }
 0x555   : > { %v1031_v23 = vpop.permute.xlu2 %1030 }
 0x556   : > { %1034 = vst.msk [vmem:[#allocation2] sm:$0xff] %vm1033_vm7, %v1031_v23 }
 0x578   : > { %v1173_v29 = vpop.permute.xlu2 %1172 }
 0x588   : > { %v1102_v28 = vpop.permute.xlu1 %1101 }
 0x589   : > { %1105 = vst.msk [vmem:[#allocation2] sm:$0xff] %vm1104_vm8, %v1102_v28 }
 0x58a   : > { %1176 = vst.msk [vmem:[#allocation2] sm:$0xff] %vm1175_vm9, %v1173_v29 }
 0x591   : > { %v1177_v30 = vld [vmem:[#allocation2] sm:$0xff] }
 0x592   : > { %2017 = vmatmul.msk.f32.vlgmr.msra.gmra.mxu1 %vm829_vm0, %v1177_v30 }
 0x60f   : > { %v1206_v33 = vpop.f32.mrf.mxu1 }
 0x610   : > { %v1207_v34 = vadd.f32 %v2127_v31, %v1206_v33 }
 0x612   : > { %v2837_v35 = vadd.f32 %v1207_v34, %v2730_v50  ;;  %v1244_v50 = vld [vmem:[%s3127_s11 + $0x10] sm:$0xff] }
 0x613   : > { %1266 = vmatpush.msra.mxu2 %v1244_v50 }
 0x614   : > { %v1212_v36 = vsel %vm829_vm0, %v2837_v35, 0.0 }
 0x615   : > { %1213 = vadd.xlane.f32.xlu0 %v1212_v36  ;;  %1267 = vmatpush.msra.mxu2 %v1243_v43 }
 0x617   : > { %1268 = vmatpush.msra.mxu2 %v1242_v44 }
 0x688   : > { %v1214_v37 = vpop.xlane.xlu0 %1213 }
 0x689   : > { %v1215_v38 = vmul.f32 %v1214_v37, %v2734_v58 }
 0x68b   : > { %v1216_v39 = vsub.f32 %v2837_v35, %v1215_v38 }
 0x68d   : > { %v1217_v40 = vmul.f32 %v1216_v39, %v1216_v39 }
 0x68f   : > { %v1218_v41 = vsel %vm829_vm0, %v1217_v40, 0.0  ;;  %v2272_v40 = vmov -1.0  }
 0x690   : > { %1219 = vadd.xlane.f32.xlu1 %v1218_v41 }
 0x703   : > { %v1220_v45 = vpop.xlane.xlu1 %1219 }
 0x704   : > { %v1221_v46 = vmul.f32 %v1220_v45, %v2734_v58  ;;  %v2131_v45 = vld [vmem:[%s3130_s14] ss:$0 sm:$0xff] }
 0x706   : > { %v1222_v47 = vadd.f32 1e-06, %v1221_v46 }
 0x708   : > { %2160 = vrsqrt.f32 %v1222_v47  ;;  %vm1229_vm11 = vweird.f32 %v1222_v47 }
 0x70e   : > { %v2161_v48 = vpop.eup %2160 }
 0x70f   : > { %v1224_v49 = vmul.f32 %v2161_v48, %v1222_v47  ;;  %vm1230_vm10 = vweird.f32 %v2161_v48 }
 0x710   : > { %vm1231_vm12 = vmor %vm1229_vm11, %vm1230_vm10 }
 0x711   : > { %v1225_v51 = vmul.f32 %v2161_v48, %v1224_v49 }
 0x713   : > { %v1226_v52 = vmul.f32 0.5, %v1225_v51 }
 0x715   : > { %v1227_v53 = vsub.f32 1.5, %v1226_v52 }
 0x717   : > { %v1228_v54 = vmul.f32 %v2161_v48, %v1227_v53 }
 0x719   : > { %v1232_v56 = vsel %vm1231_vm12, %v2161_v48, %v1228_v54 }
 0x71a   : > { %v1233_v57 = vmul.f32 %v1232_v56, %v1216_v39  ;;  %v2025_v56 = vld [vmem:[%s3175_s5 + $0x38] sm:$0xff] }
 0x71b   : > { %1410 = vmatpush.msra.mxu0 %v2025_v56 }
 0x71c   : > { %v1237_v60 = vmul.f32 %v2128_v55, %v1233_v57  ;;  %v2023_v57 = vld [vmem:[%s3175_s5 + $0x28] sm:$0xff] }
 0x71e   : > { %v1241_v61 = vadd.f32 %v2129_v59, %v1237_v60  ;;  %v2022_v59 = vld [vmem:[%s3175_s5 + $0x20] sm:$0xff] }
 0x720   : > { %2018 = vmatmul.msk.f32.vlgmr.msra.gmra.mxu2 %vm829_vm0, %v1241_v61 }
 0x7a3   : > { %v1270_v63 = vpop.f32.mrf.mxu2 }
 0x7a4   : > { %v1271_v0 = vadd.f32 %v2130_v62, %v1270_v63 }
 0x7a6   : > { %v1274_v1 = vmul.f32 0.70710677, %v1271_v0  ;;  %v1273_v50 = vmul.f32 0.5, %v1271_v0 }
 0x7a8   : > { %v1277_v2 = vand.u32 2147483647, %v1274_v1  ;;  %vm1275_vm2 = vcmp.ge.f32.partialorder %v1274_v1, 0.0 }
 0x7a9   : > { %v1276_v41 = vsel %vm1275_vm2, 1.0, %v2272_v40 }
 0x7aa   : > { %v1278_v3 = vmul.f32 0.3275911, %v1277_v2  ;;  %v1304_v23 = vsub.f32 0.0, %v1277_v2 }
 0x7ac   : > { %v1279_v4 = vadd.f32 1.0, %v1278_v3  ;;  %v1305_v26 = vmul.f32 %v1304_v23, %v1277_v2 }
 0x7ae   : > { %2162 = vrcp.f32 %v1279_v4  ;;  %v1291_v14 = vand.u32 2147483648, %v1279_v4  ;;  %v1289_v17 = vand.u32 2147483647, %v1279_v4  ;;  %vm1285_vm14 = vweird.f32 %v1279_v4 }
 0x7af   : > { %v1306_v29 = vmul.f32 1.442695, %v1305_v26 }
 0x7b0   : > { %v1292_v20 = vor.u32 1.1754944e-38, %v1291_v14  ;;  %vm1290_vm1 = vcmp.eq.f32.partialorder %v1289_v17, 8.507059e+37 }
 0x7b1   : > { %2164 = vpow2.f32 %v1306_v29 }
 0x7b4   : > { %v2163_v9 = vpop.eup %2162 }
 0x7b5   : > { %v1281_v11 = vmul.f32 %v2163_v9, %v1279_v4  ;;  %vm1286_vm13 = vweird.f32 %v2163_v9 }
 0x7b6   : > { %vm1287_vm15 = vmor %vm1285_vm14, %vm1286_vm13 }
 0x7b7   : > { %v1282_v13 = vsub.f32 1.0, %v1281_v11  ;;  %v2165_v37 = vpop.eup %2164  ;;  %v2134_v11 = vld [vmem:[%s3122_s6 + $0x1] ss:$0 sm:$0xff] }
 0x7b9   : > { %v1283_v16 = vmul.f32 %v2163_v9, %v1282_v13 }
 0x7bb   : > { %v1284_v19 = vadd.f32 %v2163_v9, %v1283_v16 }
 0x7bd   : > { %v1288_v21 = vsel %vm1287_vm15, %v2163_v9, %v1284_v19  ;;  %vm1876_vm15 = vcmask 253952  }
 0x7be   : > { %v1293_v22 = vsel %vm1290_vm1, %v1292_v20, %v1288_v21 }
 0x7bf   : > { %v1295_v24 = vmul.f32 1.0614054, %v1293_v22 }
 0x7c1   : > { %v1296_v25 = vadd.f32 -1.4531521, %v1295_v24 }
 0x7c3   : > { %v1297_v27 = vmul.f32 %v1296_v25, %v1293_v22 }
 0x7c5   : > { %v1298_v28 = vadd.f32 1.4214138, %v1297_v27 }
 0x7c7   : > { %v1299_v30 = vmul.f32 %v1298_v28, %v1293_v22 }
 0x7c9   : > { %v1300_v31 = vadd.f32 -0.28449672, %v1299_v30 }
 0x7cb   : > { %v1301_v33 = vmul.f32 %v1300_v31, %v1293_v22 }
 0x7cd   : > { %v1302_v34 = vadd.f32 0.2548296, %v1301_v33 }
 0x7cf   : > { %v1303_v36 = vmul.f32 %v1302_v34, %v1293_v22 }
 0x7d1   : > { %v1308_v38 = vmul.f32 %v2165_v37, %v1303_v36 }
 0x7d3   : > { %v1309_v39 = vsub.f32 1.0, %v1308_v38 }
 0x7d5   : > { %v1310_v42 = vmul.f32 %v1309_v39, %v1276_v41 }
 0x7d7   : > { %v1311_v43 = vadd.f32 1.0, %v1310_v42 }
 0x7d9   : > { %v1312_v44 = vmul.f32 %v1311_v43, %v1273_v50 }
 0x7db   : > { %2019 = vmatmul.msk.f32.vlgmr.msrb.gmra.mxu3 %vm1321_vm3, %v1312_v44 }
 0x85e   : > { %v1342_v46 = vpop.f32.mrf.mxu3 }
 0x85f   : > { %v1345_v47 = vadd.f32 %v1342_v46, %v2837_v35  ;;  %v2024_v35 = vld [vmem:[%s3175_s5 + $0x30] sm:$0xff] }
 0x860   : > { %1411 = vmatpush.msra.mxu0 %v2024_v35 }
 0x861   : > { %v2897_v48 = vadd.f32 %v2131_v45, %v1345_v47 }
 0x862   : > { %1412 = vmatpush.msra.mxu0 %v2023_v57 }
 0x863   : > { %v1355_v49 = vsel %vm829_vm0, %v2897_v48, 0.0 }
 0x864   : > { %1356 = vadd.xlane.f32.xlu2 %v1355_v49  ;;  %1413 = vmatpush.msra.mxu0 %v2022_v59 }
 0x8d7   : > { %v1357_v51 = vpop.xlane.xlu2 %1356 }
 0x8d8   : > { %v1358_v52 = vmul.f32 %v1357_v51, %v2734_v58 }
 0x8da   : > { %v1359_v53 = vsub.f32 %v2897_v48, %v1358_v52 }
 0x8dc   : > { %v1360_v54 = vmul.f32 %v1359_v53, %v1359_v53 }
 0x8de   : > { %v1361_v55 = vsel %vm829_vm0, %v1360_v54, 0.0 }
 0x8df   : > { %1362 = vadd.xlane.f32.xlu0 %v1361_v55 }
 0x952   : > { %v1363_v60 = vpop.xlane.xlu0 %1362 }
 0x953   : > { %v1364_v61 = vmul.f32 %v1363_v60, %v2734_v58 }
 0x955   : > { %v1365_v62 = vadd.f32 1e-06, %v1364_v61 }
 0x957   : > { %2166 = vrsqrt.f32 %v1365_v62  ;;  %vm1372_vm6 = vweird.f32 %v1365_v62 }
 0x95d   : > { %v2167_v63 = vpop.eup %2166 }
 0x95e   : > { %v1367_v0 = vmul.f32 %v2167_v63, %v1365_v62  ;;  %vm1373_vm4 = vweird.f32 %v2167_v63 }
 0x95f   : > { %vm1374_vm10 = vmor %vm1372_vm6, %vm1373_vm4  ;;  %vm1929_vm4 = vcmask 73728  }
 0x960   : > { %v1368_v1 = vmul.f32 %v2167_v63, %v1367_v0 }
 0x962   : > { %v1369_v2 = vmul.f32 0.5, %v1368_v1 }
 0x964   : > { %v1370_v3 = vsub.f32 1.5, %v1369_v2 }
 0x966   : > { %v1371_v4 = vmul.f32 %v2167_v63, %v1370_v3 }
 0x968   : > { %v1375_v6 = vsel %vm1374_vm10, %v2167_v63, %v1371_v4 }
 0x969   : > { %v1376_v7 = vmul.f32 %v1375_v6, %v1359_v53 }
 0x96b   : > { %v1380_v9 = vmul.f32 %v2132_v5, %v1376_v7 }
 0x96d   : > { %v1384_v10 = vadd.f32 %v2133_v8, %v1380_v9 }
 0x96f   : > { %2027 = vmatmul.msk.f32.vlgmr.msra.gmra.mxu0 %vm829_vm0, %v1384_v10 }
 0x9ec   : > { %v1415_v12 = vpop.f32.mrf.mxu0 }
 0x9ed   : > { %v2927_v13 = vadd.f32 %v2134_v11, %v1415_v12  ;;  %v2043_v12 = vld [vmem:[%s3123_s7 + $0x38] sm:$0xff] }
 0x9ef   : > { %1555 = vrot.lane.b32.xlu0 %v2927_v13, %s2260_s22  ;;  %1419 = vrot.lane.b32.xlu1 %v2927_v13, %s2259_s24  ;;  %s3180_s24 = smov 72   ;;  %s3181_s22 = smov 120  }
 0x9f7   : > { %1553 = vrot.lane.b32.xlu1 %v2927_v13, %s2257_s28  ;;  %s3179_s28 = smov 64  }
 0x9ff   : > { %1485 = vrot.lane.b32.xlu1 %v2927_v13, %s2261_s0  ;;  %s3182_s0 = smov 56  }
 0xa07   : > { %1623 = vrot.lane.b32.xlu1 %v2927_v13, %s3178_s21 }
 0xa61   : > { %v1420_v14 = vpop.permute.xlu1 %1419  ;;  %v1556_v24 = vpop.permute.xlu0 %1555 }
 0xa62   : > { %2028 = vmatpush.xpose.msk.msrb.mxu1 %vm901_vm5, %v1420_v14  ;;  %v2041_v14 = vld [vmem:[%s3123_s7 + $0x28] sm:$0xff] }
 0xa65   : > { %2029 = vmatmul.msk.f32.vlgmr.msrb.gmra.mxu1 %vm901_vm5, %v2927_v13 }
 0xa69   : > { %v1554_v15 = vpop.permute.xlu1 %1553 }
 0xa71   : > { %v1486_v16 = vpop.permute.xlu1 %1485 }
 0xa72   : > { %2031 = vmatpush.xpose.msk.msrb.mxu0 %vm901_vm5, %v1486_v16 }
 0xa79   : > { %v1624_v33 = vpop.permute.xlu1 %1623 }
 0xae2   : > { %v1442_v17 = vpop.f32.mrf.mxu1 }
 0xae3   : > { %v1443_v18 = vadd.f32 %v1442_v17, %v2787_v32 }
 0xae5   : > { %v1445_v19 = vsel %vm901_vm5, %v1443_v18, -inf }
 0xae6   : > { %1446 = vmax.xlane.f32.xlu2 %v1445_v19 }
 0xafe   : > { %1456 = vrot.lane.b32.xlu2 %v2927_v13, %s3179_s28 }
 0xb06   : > { %1625 = vrot.lane.b32.xlu2 %v2927_v13, %s3180_s24 }
 0xb59   : > { %v1447_v20 = vpop.xlane.xlu2 %1446 }
 0xb5a   : > { %v1448_v21 = vsub.f32 %v1443_v18, %v1447_v20  ;;  %v2135_v20 = vld [vmem:[%s3124_s8 + $0x1] ss:$0 sm:$0xff] }
 0xb5c   : > { %v1449_v22 = vmul.f32 1.442695, %v1448_v21 }
 0xb5e   : > { %2168 = vpow2.f32 %v1449_v22 }
 0xb61   : > { %v1457_v23 = vpop.permute.xlu2 %1456 }
 0xb62   : > { %1477 = vmatpush.msrb.mxu2 %v1457_v23 }
 0xb64   : > { %2034 = vmatpush.xpose.msk.msra.mxu2 %vm901_vm5, %v1556_v24  ;;  %v2169_v25 = vpop.eup %2168 }
 0xb65   : > { %v1451_v26 = vsel %vm901_vm5, %v2169_v25, 0.0 }
 0xb66   : > { %1452 = vadd.xlane.f32.xlu0 %v1451_v26 }
 0xb69   : > { %v1626_v27 = vpop.permute.xlu2 %1625 }
 0xb6a   : > { %2037 = vmatpush.xpose.msk.msra.mxu0 %vm901_vm5, %v1626_v27 }
 0xb7a   : > { %1483 = vrot.lane.b32.xlu0 %v2927_v13, %s3181_s22 }
 0xbd9   : > { %v1453_v28 = vpop.xlane.xlu0 %1452 }
 0xbda   : > { %2170 = vrcp.f32 %v1453_v28 }
 0xbe0   : > { %v2171_v29 = vpop.eup %2170 }
 0xbe1   : > { %v1455_v30 = vmul.f32 %v2171_v29, %v2169_v25 }
 0xbe3   : > { %2030 = vmatmul.msk.f32.vlgmr.msrb.gmra.mxu2 %vm901_vm5, %v1455_v30  ;;  %v2051_v30 = vld [vmem:[%s3127_s11 + $0x38] sm:$0xff] }
 0xbe4   : > { %1719 = vmatpush.msrb.mxu2 %v2043_v12 }
 0xbeb   : > { %2035 = vmatmul.msk.f32.vlgmr.msra.gmra.mxu2 %vm901_vm5, %v1554_v15  ;;  %v2040_v15 = vld [vmem:[%s3123_s7 + $0x20] sm:$0xff] }
 0xbec   : > { %v1484_v31 = vpop.permute.xlu0 %1483 }
 0xbed   : > { %2032 = vmatmul.msk.f32.vlgmr.msrb.gmra.mxu0 %vm901_vm5, %v1484_v31  ;;  %v2049_v31 = vld [vmem:[%s3127_s11 + $0x28] sm:$0xff] }
 0xbf5   : > { %2038 = vmatmul.msk.f32.vlgmr.msra.gmra.mxu0 %vm901_vm5, %v1624_v33  ;;  %v2048_v33 = vld [vmem:[%s3127_s11 + $0x20] sm:$0xff] }
 0xc66   : > { %v1479_v34 = vpop.f32.mrf.mxu2 }
 0xc67   : > { %1482 = vst.msk [vmem:[#allocation2] sm:$0xff] %vm901_vm5, %v1479_v34 }
 0xc6a   : > { %v1508_v36 = vpop.f32.mrf.mxu0 }
 0xc6b   : > { %v1509_v37 = vadd.f32 %v1508_v36, %v2787_v32 }
 0xc6d   : > { %v1511_v38 = vsel %vm901_vm5, %v1509_v37, -inf }
 0xc6e   : > { %v1578_v39 = vpop.f32.mrf.mxu2  ;;  %1512 = vmax.xlane.f32.xlu0 %v1511_v38 }
 0xc6f   : > { %v1579_v41 = vadd.f32 %v1578_v39, %v2787_v32 }
 0xc71   : > { %v1581_v42 = vsel %vm901_vm5, %v1579_v41, -inf }
 0xc72   : > { %1582 = vmax.xlane.f32.xlu2 %v1581_v42  ;;  %v1648_v50 = vpop.f32.mrf.mxu0 }
 0xc73   : > { %v1649_v43 = vadd.f32 %v1648_v50, %v2787_v32 }
 0xc75   : > { %v1651_v44 = vsel %vm901_vm5, %v1649_v43, -inf }
 0xc76   : > { %1652 = vmax.xlane.f32.xlu1 %v1651_v44  ;;  %v2136_v44 = vld [vmem:[%s3125_s9 + $0x1] ss:$0 sm:$0xff] }
 0xce1   : > { %v1513_v45 = vpop.xlane.xlu0 %1512 }
 0xce2   : > { %v1514_v46 = vsub.f32 %v1509_v37, %v1513_v45 }
 0xce4   : > { %v1515_v47 = vmul.f32 1.442695, %v1514_v46 }
 0xce5   : > { %v1583_v49 = vpop.xlane.xlu2 %1582 }
 0xce6   : > { %2172 = vpow2.f32 %v1515_v47  ;;  %v1584_v51 = vsub.f32 %v1579_v41, %v1583_v49  ;;  %v2137_v47 = vld [vmem:[%s3126_s10 + $0x1] ss:$0 sm:$0xff] }
 0xce8   : > { %v1585_v52 = vmul.f32 1.442695, %v1584_v51 }
 0xce9   : > { %v1653_v53 = vpop.xlane.xlu1 %1652 }
 0xcea   : > { %2174 = vpow2.f32 %v1585_v52  ;;  %v1654_v54 = vsub.f32 %v1649_v43, %v1653_v53  ;;  %v2138_v52 = vld [vmem:[%s3128_s12 + $0x1] ss:$0 sm:$0xff] }
 0xcec   : > { %v2173_v55 = vpop.eup %2172  ;;  %v1655_v56 = vmul.f32 1.442695, %v1654_v54 }
 0xced   : > { %v1517_v35 = vsel %vm901_vm5, %v2173_v55, 0.0 }
 0xcee   : > { %2176 = vpow2.f32 %v1655_v56  ;;  %1518 = vadd.xlane.f32.xlu0 %v1517_v35 }
 0xcf0   : > { %v2175_v32 = vpop.eup %2174 }
 0xcf1   : > { %v1587_v57 = vsel %vm901_vm5, %v2175_v32, 0.0 }
 0xcf2   : > { %1588 = vadd.xlane.f32.xlu2 %v1587_v57  ;;  %v2061_v57 = vld [vmem:[%s3129_s13 + $0x78] sm:$0xff] }
 0xcf3   : > { %1855 = vmatpush.msrb.mxu0 %v2061_v57 }
 0xcf4   : > { %v2177_v59 = vpop.eup %2176 }
 0xcf5   : > { %v1657_v60 = vsel %vm901_vm5, %v2177_v59, 0.0 }
 0xcf6   : > { %1658 = vadd.xlane.f32.xlu1 %v1657_v60  ;;  %v2059_v60 = vld [vmem:[%s3129_s13 + $0x68] sm:$0xff] }
 0xd02   : > { %1522 = vrot.lane.b32.xlu0 %v2927_v13, %s3182_s0  ;;  %s593_s0 = sand.u32 1, %s2246_s30  }
 0xd03   : > { %s594_s21 = scalar_lea.vmem [#allocation3], %s593_s0  ;;  %s1932_s24 = scalar_lea.sflag [#allocation4], %s593_s0 }
 0xd04   : > { %s1942_s28 = sshll.u32 %s594_s21, 4  ;;  %s1943_s28 = int_to_ptr.vmem [resolvable:$true] %s1942_s28 }
 0xd0a   : > { %1592 = vrot.lane.b32.xlu2 %v2927_v13, %s3183_s25 }
 0xd0f   : > { %1662 = vrot.lane.b32.xlu1 %v2927_v13, %s3184_s20  ;;  %v2042_v13 = vld [vmem:[%s3123_s7 + $0x30] sm:$0xff]  ;;  %s2212_s20 = scalar_lea.hbm %s3135_s19, 2 }
 0xd10   : > { %1720 = vmatpush.msrb.mxu2 %v2042_v13 }
 0xd12   : > { %1721 = vmatpush.msrb.mxu2 %v2041_v14 }
 0xd14   : > { %1722 = vmatpush.msrb.mxu2 %v2040_v15 }
 0xd61   : > { %v1519_v62 = vpop.xlane.xlu0 %1518 }
 0xd65   : > { %v1589_v61 = vpop.xlane.xlu2 %1588 }
 0xd66   : > { %2178 = vrcp.f32 %v1589_v61  ;;  %v2058_v61 = vld [vmem:[%s3129_s13 + $0x60] sm:$0xff] }
 0xd67   : > { %2180 = vrcp.f32 %v1519_v62 }
 0xd69   : > { %v1659_v5 = vpop.xlane.xlu1 %1658 }
 0xd6a   : > { %2182 = vrcp.f32 %v1659_v5 }
 0xd6c   : > { %v2179_v63 = vpop.eup %2178 }
 0xd6d   : > { %v1591_v0 = vmul.f32 %v2179_v63, %v2175_v32  ;;  %v1593_v1 = vpop.permute.xlu2 %1592  ;;  %v2181_v2 = vpop.eup %2180  ;;  %v2057_v63 = vld [vmem:[%s3129_s13 + $0x58] sm:$0xff] }
 0xd6e   : > { %1613 = vmatpush.msra.mxu3 %v1593_v1  ;;  %v1521_v3 = vmul.f32 %v2181_v2, %v2173_v55  ;;  %v2056_v1 = vld [vmem:[%s3129_s13 + $0x50] sm:$0xff] }
 0xd6f   : > { %2036 = vmatmul.msk.f32.vlgmr.msra.gmra.mxu3 %vm901_vm5, %v1591_v0 }
 0xd70   : > { %v2183_v6 = vpop.eup %2182  ;;  %1787 = vmatpush.msrb.mxu3 %v2051_v30 }
 0xd71   : > { %v1661_v7 = vmul.f32 %v2183_v6, %v2177_v59  ;;  %v2060_v59 = vld [vmem:[%s3129_s13 + $0x70] sm:$0xff] }
 0xd72   : > { %1856 = vmatpush.msrb.mxu0 %v2060_v59 }
 0xd74   : > { %v1523_v4 = vpop.permute.xlu0 %1522  ;;  %1857 = vmatpush.msrb.mxu0 %v2059_v60 }
 0xd75   : > { %1543 = vmatpush.msra.mxu1 %v1523_v4  ;;  %v2055_v4 = vld [vmem:[%s3129_s13 + $0x48] sm:$0xff] }
 0xd76   : > { %2033 = vmatmul.msk.f32.vlgmr.msra.gmra.mxu1 %vm901_vm5, %v1521_v3  ;;  %1858 = vmatpush.msrb.mxu0 %v2058_v61  ;;  %v1905_v61 = vld [vmem:[%s3188_s18] sm:$0x1] }
 0xd78   : > { %1859 = vmatpush.msrb.mxu0 %v2057_v63 }
 0xd7a   : > { %1860 = vmatpush.msrb.mxu0 %v2056_v1 }
 0xd7c   : > { %1861 = vmatpush.msrb.mxu0 %v2055_v4 }
 0xd81   : > { %v1663_v8 = vpop.permute.xlu1 %1662 }
 0xd82   : > { %1683 = vmatpush.msrb.mxu1 %v1663_v8 }
 0xd83   : > { %2039 = vmatmul.msk.f32.vlgmr.msrb.gmra.mxu1 %vm901_vm5, %v1661_v7  ;;  %v2054_v7 = vld [vmem:[%s3129_s13 + $0x40] sm:$0xff] }
 0xd84   : > { %1862 = vmatpush.msrb.mxu0 %v2054_v7 }
 0xdf2   : > { %v1615_v9 = vpop.f32.mrf.mxu3 }
 0xdf3   : > { %1619 = vrot.lane.b32.xlu2 %v1615_v9, %s3185_s2  ;;  %v1545_v10 = vpop.f32.mrf.mxu1  ;;  %s1940_s2 = scalar_lea.hbm %s3135_s19, %s2394_s1 }
 0xdf4   : > { %1549 = vrot.lane.b32.xlu0 %v1545_v10, %s3186_s27  ;;  %s1944_s4 = sshll.u32 %s1940_s2, 4  ;;  %s1945_s4 = int_to_ptr.hbm [resolvable:$true] %s1944_s4 }
 0xdf5   : > { %s2206_s22 = sshra.s32 %s1945_s4, 4  ;;  %s2207_s22 = int_to_ptr.hbm [resolvable:$true] %s2206_s22 }
 0xdf6   : > { %s2208_s5 = scalar_lea.hbm %s2207_s22, 1  ;;  %p2213_p0 = scmp.lt.s32.totalorder %s2207_s22, %s3135_s19 }
 0xdf7   : > { %p2209_p11 = scmp.ne.s32.totalorder %s2207_s22, %s2208_s5  ;;  %p2214_p1 = scmp.lt.s32.totalorder %s2212_s20, %s2208_s5 }
 0xdf9   : > { %p2210_p12 = pnand %p2209_p11, %p2411_p5  ;;  %p2215_p2 = por %p2214_p1, %p2213_p0 }
 0xdfb   : > { %p2211_p13 = pneg %p2210_p12 }
 0xdfd   : > { %p2216_p3 = pnand %p2215_p2, %p2211_p13 }
 0xe00   : > { %v1685_v11 = vpop.f32.mrf.mxu1 }
 0xe01   : > { %1689 = vrot.lane.b32.xlu0 %v1685_v11, %s3187_s3 }
 0xe4d   : > { %v1620_v17 = vpop.permute.xlu2 %1619 }
 0xe66   : > { %v1550_v16 = vpop.permute.xlu0 %1549 }
 0xe67   : > { %1552 = vst.msk [vmem:[#allocation2] sm:$0xff] %vm1033_vm7, %v1550_v16 }
 0xe68   : > { %1622 = vst.msk [vmem:[#allocation2] sm:$0xff] %vm1104_vm8, %v1620_v17 }
 0xe73   : > { %v1690_v18 = vpop.permute.xlu0 %1689 }
 0xe74   : > { %1692 = vst.msk [vmem:[#allocation2] sm:$0xff] %vm1175_vm9, %v1690_v18 }
 0xe7b   : > { %v1693_v19 = vld [vmem:[#allocation2] sm:$0xff] }
 0xe7c   : > { %2045 = vmatmul.msk.f32.vlgmr.msrb.gmra.mxu2 %vm829_vm0, %v1693_v19 }
 0xeff   : > { %v1724_v21 = vpop.f32.mrf.mxu2 }
 0xf00   : > { %v1725_v22 = vadd.f32 %v2135_v20, %v1724_v21 }
 0xf02   : > { %v3000_v23 = vadd.f32 %v1725_v22, %v2897_v48  ;;  %v2050_v48 = vld [vmem:[%s3127_s11 + $0x30] sm:$0xff] }
 0xf03   : > { %1788 = vmatpush.msrb.mxu3 %v2050_v48 }
 0xf04   : > { %v1732_v24 = vsel %vm829_vm0, %v3000_v23, 0.0 }
 0xf05   : > { %1733 = vadd.xlane.f32.xlu1 %v1732_v24  ;;  %1789 = vmatpush.msrb.mxu3 %v2049_v31 }
 0xf07   : > { %1790 = vmatpush.msrb.mxu3 %v2048_v33  ;;  %v2139_v33 = vld [vmem:[%s3130_s14 + $0x1] ss:$0 sm:$0xff] }
 0xf78   : > { %v1734_v25 = vpop.xlane.xlu1 %1733 }
 0xf79   : > { %v1735_v26 = vmul.f32 %v1734_v25, %v2734_v58 }
 0xf7b   : > { %v1736_v27 = vsub.f32 %v3000_v23, %v1735_v26 }
 0xf7d   : > { %v1737_v28 = vmul.f32 %v1736_v27, %v1736_v27 }
 0xf7f   : > { %v1738_v29 = vsel %vm829_vm0, %v1737_v28, 0.0 }
 0xf80   : > { %1739 = vadd.xlane.f32.xlu2 %v1738_v29 }
 0xff3   : > { %v1740_v34 = vpop.xlane.xlu2 %1739 }
 0xff4   : > { %v1741_v36 = vmul.f32 %v1740_v34, %v2734_v58 }
 0xff6   : > { %v1742_v37 = vadd.f32 1e-06, %v1741_v36 }
 0xff8   : > { %2184 = vrsqrt.f32 %v1742_v37  ;;  %vm1749_vm7 = vweird.f32 %v1742_v37 }
 0xffe   : > { %v2185_v38 = vpop.eup %2184 }
 0xfff   : > { %v1744_v39 = vmul.f32 %v2185_v38, %v1742_v37  ;;  %vm1750_vm5 = vweird.f32 %v2185_v38 }
0x1000   : > { %vm1751_vm8 = vmor %vm1749_vm7, %vm1750_vm5 }
0x1001   : > { %v1745_v41 = vmul.f32 %v2185_v38, %v1744_v39 }
0x1003   : > { %v1746_v42 = vmul.f32 0.5, %v1745_v41 }
0x1005   : > { %v1747_v50 = vsub.f32 1.5, %v1746_v42 }
0x1007   : > { %v1748_v43 = vmul.f32 %v2185_v38, %v1747_v50 }
0x1009   : > { %v1752_v45 = vsel %vm1751_vm8, %v2185_v38, %v1748_v43  ;;  %v1904_v43 = vld [vmem:[%s3133_s17 + $0x18] sm:$0xff] }
0x100a   : > { %v1753_v46 = vmul.f32 %v1752_v45, %v1736_v27  ;;  %1921 = vmatpush.msra.mxu1 %v1904_v43  ;;  %v1901_v45 = vld [vmem:[%s3133_s17] sm:$0xff] }
0x100c   : > { %v1757_v49 = vmul.f32 %v2136_v44, %v1753_v46  ;;  %v1902_v44 = vld [vmem:[%s3133_s17 + $0x8] sm:$0xff] }
0x100e   : > { %v1761_v51 = vadd.f32 %v2137_v47, %v1757_v49 }
0x1010   : > { %2053 = vmatmul.msk.f32.vlgmr.msrb.gmra.mxu3 %vm829_vm0, %v1761_v51 }
0x1093   : > { %v1792_v53 = vpop.f32.mrf.mxu3 }
0x1094   : > { %v1793_v54 = vadd.f32 %v2138_v52, %v1792_v53 }
0x1096   : > { %v1796_v55 = vmul.f32 0.70710677, %v1793_v54  ;;  %v1795_v30 = vmul.f32 0.5, %v1793_v54 }
0x1098   : > { %v1799_v56 = vand.u32 2147483647, %v1796_v55  ;;  %vm1797_vm14 = vcmp.ge.f32.partialorder %v1796_v55, 0.0 }
0x1099   : > { %v1798_v28 = vsel %vm1797_vm14, 1.0, %v2272_v40 }
0x109a   : > { %v1800_v35 = vmul.f32 0.3275911, %v1799_v56  ;;  %v1826_v12 = vsub.f32 0.0, %v1799_v56 }
0x109c   : > { %v1801_v32 = vadd.f32 1.0, %v1800_v35  ;;  %v1827_v15 = vmul.f32 %v1826_v12, %v1799_v56  ;;  %v1874_v35 = vld [vmem:[%s3131_s15] sm:$0x1] }
0x109e   : > { %2186 = vrcp.f32 %v1801_v32  ;;  %v1813_v3 = vand.u32 2147483648, %v1801_v32  ;;  %v1811_v6 = vand.u32 2147483647, %v1801_v32  ;;  %vm1807_vm11 = vweird.f32 %v1801_v32 }
0x109f   : > { %v1828_v18 = vmul.f32 1.442695, %v1827_v15 }
0x10a0   : > { %v1814_v9 = vor.u32 1.1754944e-38, %v1813_v3  ;;  %vm1812_vm13 = vcmp.eq.f32.partialorder %v1811_v6, 8.507059e+37 }
0x10a1   : > { %2188 = vpow2.f32 %v1828_v18 }
0x10a4   : > { %v2187_v62 = vpop.eup %2186 }
0x10a5   : > { %v1803_v0 = vmul.f32 %v2187_v62, %v1801_v32  ;;  %vm1808_vm9 = vweird.f32 %v2187_v62 }
0x10a6   : > { %vm1809_vm12 = vmor %vm1807_vm11, %vm1808_vm9 }
0x10a7   : > { %v1804_v2 = vsub.f32 1.0, %v1803_v0  ;;  %v2189_v25 = vpop.eup %2188 }
0x10a9   : > { %v1805_v5 = vmul.f32 %v2187_v62, %v1804_v2 }
0x10ab   : > { %v1806_v8 = vadd.f32 %v2187_v62, %v1805_v5 }
0x10ad   : > { %v1810_v10 = vsel %vm1809_vm12, %v2187_v62, %v1806_v8 }
0x10ae   : > { %v1815_v11 = vsel %vm1812_vm13, %v1814_v9, %v1810_v10 }
0x10af   : > { %v1817_v13 = vmul.f32 1.0614054, %v1815_v11 }
0x10b1   : > { %v1818_v14 = vadd.f32 -1.4531521, %v1817_v13 }
0x10b3   : > { %v1819_v16 = vmul.f32 %v1818_v14, %v1815_v11 }
0x10b5   : > { %v1820_v17 = vadd.f32 1.4214138, %v1819_v16 }
0x10b7   : > { %v1821_v19 = vmul.f32 %v1820_v17, %v1815_v11 }
0x10b9   : > { %v1822_v20 = vadd.f32 -0.28449672, %v1821_v19 }
0x10bb   : > { %v1823_v21 = vmul.f32 %v1822_v20, %v1815_v11 }
0x10bd   : > { %v1824_v22 = vadd.f32 0.2548296, %v1823_v21 }
0x10bf   : > { %v1825_v24 = vmul.f32 %v1824_v22, %v1815_v11 }
0x10c1   : > { %v1830_v26 = vmul.f32 %v2189_v25, %v1825_v24 }
0x10c3   : > { %v1831_v27 = vsub.f32 1.0, %v1830_v26 }
0x10c5   : > { %v1832_v29 = vmul.f32 %v1831_v27, %v1798_v28 }
0x10c7   : > { %v1833_v48 = vadd.f32 1.0, %v1832_v29 }
0x10c9   : > { %v1834_v31 = vmul.f32 %v1833_v48, %v1795_v30 }
0x10cb   : > { %2062 = vmatmul.msk.f32.vlgmr.msrb.gmra.mxu0 %vm1321_vm3, %v1834_v31 }
0x1148   : > { %v1864_v34 = vpop.f32.mrf.mxu0 }
0x1149   : > { %v1867_v36 = vadd.f32 %v1864_v34, %v3000_v23  ;;  %v1903_v23 = vld [vmem:[%s3133_s17 + $0x10] sm:$0xff] }
0x114a   : > { %1922 = vmatpush.msra.mxu1 %v1903_v23 }
0x114b   : > { %v1873_v37 = vadd.f32 %v2139_v33, %v1867_v36 }
0x114c   : > { %1923 = vmatpush.msra.mxu1 %v1902_v44 }
0x114d   : > { %v1877_v38 = vsel %vm1876_vm15, %v1873_v37, 0.0 }
0x114e   : > { %1878 = vadd.xlane.f32.xlu0 %v1877_v38  ;;  %1924 = vmatpush.msra.mxu1 %v1901_v45 }
0x11c1   : > { %v1879_v39 = vpop.xlane.xlu0 %1878 }
0x11c2   : > { %v1880_v40 = vmul.f32 %v1879_v39, %v2734_v58 }
0x11c4   : > { %v1881_v41 = vsub.f32 %v1873_v37, %v1880_v40 }
0x11c6   : > { %v1882_v42 = vmul.f32 %v1881_v41, %v1881_v41 }
0x11c8   : > { %v1883_v50 = vsel %vm1876_vm15, %v1882_v42, 0.0 }
0x11c9   : > { %1884 = vadd.xlane.f32.xlu1 %v1883_v50 }
0x123c   : > { %v1885_v46 = vpop.xlane.xlu1 %1884 }
0x123d   : > { %v1886_v47 = vmul.f32 %v1885_v46, %v2734_v58  ;;  %v1875_v58 = vld [vmem:[%s3132_s16] sm:$0x1] }
0x123f   : > { %v1887_v49 = vadd.f32 1e-06, %v1886_v47 }
0x1241   : > { %2190 = vrsqrt.f32 %v1887_v49  ;;  %vm1894_vm2 = vweird.f32 %v1887_v49 }
0x1247   : > { %v2191_v51 = vpop.eup %2190 }
0x1248   : > { %v1889_v52 = vmul.f32 %v2191_v51, %v1887_v49  ;;  %vm1895_vm1 = vweird.f32 %v2191_v51 }
0x1249   : > { %vm1896_vm3 = vmor %vm1894_vm2, %vm1895_vm1 }
0x124a   : > { %v1890_v53 = vmul.f32 %v2191_v51, %v1889_v52 }
0x124c   : > { %v1891_v54 = vmul.f32 0.5, %v1890_v53 }
0x124e   : > { %v1892_v55 = vsub.f32 1.5, %v1891_v54 }
0x1250   : > { %v1893_v56 = vmul.f32 %v2191_v51, %v1892_v55 }
0x1252   : > { %v1897_v32 = vsel %vm1896_vm3, %v2191_v51, %v1893_v56 }
0x1253   : > { %v1898_v57 = vmul.f32 %v1897_v32, %v1881_v41 }
0x1255   : > { %v1899_v59 = vmul.f32 %v1898_v57, %v1874_v35 }
0x1257   : > { %v1900_v60 = vadd.f32 %v1899_v59, %v1875_v58 }
0x1259   : > { %2064 = vmatmul.msk.f32.vlgmr.msra.gmra.mxu1 %vm829_vm0, %v1900_v60 }
0x12d6   : > { %v1926_v62 = vpop.f32.mrf.mxu1 }
0x12d7   : > { %v1927_v63 = vadd.f32 %v1926_v62, %v1905_v61 }
0x12d9   : > { %1930 = vst.msk [vmem:[%s594_s21] sm:$0x1] %vm1929_vm4, %v1927_v63 }
0x12da   : > { %2219 = shalt.err (!%p2216_p3)
}
0x12db   : > { %2068 = dma.vmem_to_hbm [thread:$0]  (%p2411_p5), %s1943_s28, 16, %s1945_s4, %s1932_s24  }
0x12dc PF: > { %s3190_s0 = sld [smem:[#allocation8_spill]] }
0x12dd   : > { %s3191_s3 = sld [smem:[#allocation6_spill]] }
0x12e2   : > { %p2074_p4 = scmp.ge.s32.totalorder %s3190_s0, 2 }
0x12e3   : > { %s1956_s21 = sand.u32 1, %s3191_s3  }
0x12e4   : > { %p2071_p7 = pnand %p2074_p4, %p2415_p6  ;;  %s1957_s1 = scalar_lea.sflag [#allocation4], %s1956_s21 }
0x12e6   : > { %p2072_p8 = pneg %p2071_p7 }
0x12e8   : > { %2237 = dma.done.wait (%p2072_p8), %s1957_s1, 16  }
0x12e9   : > { %2239 = vsyncadd (%p2072_p8), %s1957_s1, 4294967280  ;;  %s3193_s21 = sld [smem:[#allocation9_spill]]  ;;  %s3196_s0 = smov %s2246_s30 }
0x12ea   : > { %s3194_s5 = sld [smem:[#allocation7_spill]] }
0x12eb   : > { %s3195_s20 = sld [smem:[#allocation10_spill]] }
0x12ef   : > { %p29_p9 = scmp.ge.s32.totalorder %s3193_s21, 4  }
0x12f0   : > { %s3197_s30 = smov %s3194_s5 }
0x12f1   :  { %31 = sbr.rel (!%p29_p9) target bundleno = 11 (0xb), region = 143 }
0x12f6   :  { %1962 = vsyncpa [#allocation4], 1 }
0x12f7   :  { %1964 = vsyncpa [#allocation4 + $0x1], 1 }

</bundles_post_ra>
